<compile_context>
chip_gen: v6e
topology: v6e:2x2x1
jax: 0.10.0
libtpu: 0.0.40
codegen_flags: <defaults>
</compile_context>

<pallas_src>
import functools

import numpy as np
import jax
import jax.numpy as jnp
from jax.experimental import pallas as pl
from jax.experimental.pallas import tpu as pltpu

_BN_EPS = 1e-5


# ----------------------------------------------------------------------------
# Host-side helper: SAME-padding validity masks for the rolled-flat im2col.
# ----------------------------------------------------------------------------
def _make_shift_masks(H, W, KH, KW):
    """(KH*KW, H*W) f32 masks: 1.0 where the shifted sample is inside the
    image, 0.0 where it falls in the 'SAME' zero-padding halo."""
    ph, pw = KH // 2, KW // 2
    hh, ww = np.meshgrid(np.arange(H), np.arange(W), indexing="ij")
    hh = hh.reshape(-1)
    ww = ww.reshape(-1)
    rows = []
    for kh in range(KH):
        for kw in range(KW):
            dh, dw = kh - ph, kw - pw
            valid = ((hh + dh >= 0) & (hh + dh < H) &
                     (ww + dw >= 0) & (ww + dw < W))
            rows.append(valid.astype(np.float32))
    return jnp.asarray(np.stack(rows))


# ----------------------------------------------------------------------------
# In-kernel helper: 'SAME' stride-1 3x3 conv, channel-major, one MXU matmul.
# ----------------------------------------------------------------------------
def _conv_channel_major(inp, wT_ref, masks_ref, slab_ref, *, H, W, KH, KW):
    """inp:       (Cin, H*W)          f32 activation (spatial flat on lanes)
       wT_ref:    (Cout, KH*KW*Cin)   bf16 transposed conv weight
       masks_ref: (KH*KW, H*W)        f32 padding-validity masks
       slab_ref:  (KH*KW*Cin, H*W)    bf16 im2col scratch (lane-dense rows)
       returns    (Cout, H*W)         f32 conv result (f32 accumulation)
    """
    HW = H * W
    C = inp.shape[0]
    ph, pw = KH // 2, KW // 2
    for kh in range(KH):
        for kw in range(KW):
            t = kh * KW + kw
            d = (kh - ph) * W + (kw - pw)          # flat spatial shift
            # shifted[p] = inp[p + d] (lane rotation on the XLU), padding
            # positions zeroed by the precomputed mask.
            shifted = inp if d == 0 else pltpu.roll(inp, (-d) % HW, axis=1)
            slab_ref[t * C:(t + 1) * C, :] = (
                shifted * masks_ref[t:t + 1, :]).astype(jnp.bfloat16)
    return jnp.dot(wT_ref[...], slab_ref[...],
                   preferred_element_type=jnp.float32)


# ----------------------------------------------------------------------------
# Fused Encoder kernel: conv_stem + bn1 + act1 + block0 + block1
# ----------------------------------------------------------------------------
def _encoder_kernel(x_ref, masks_ref,
                    w0_ref, sb0_ref, w1_ref, sb1_ref, w2_ref, sb2_ref,
                    conv_ref, bn_ref, act_ref, b0_ref, b1_ref,
                    slab0, slab1, slab2, *, H, W, KH, KW):
    conv = functools.partial(_conv_channel_major, masks_ref=masks_ref,
                             H=H, W=W, KH=KH, KW=KW)

    # --- conv_stem -----------------------------------------------------------
    acc = conv(x_ref[0], wT_ref=w0_ref, slab_ref=slab0)        # (Cstem, HW)
    conv_ref[0] = acc.astype(conv_ref.dtype)
    # --- bn1 (eval-mode, folded scale/bias; broadcast over lanes) ------------
    bn = acc * sb0_ref[:, 0:1] + sb0_ref[:, 1:2]
    bn_ref[0] = bn.astype(bn_ref.dtype)
    # --- act1 (SiLU) ----------------------------------------------------------
    act = bn * jax.nn.sigmoid(bn)
    act_ref[0] = act.astype(act_ref.dtype)

    # --- blocks[0]: Conv3x3 + folded BN + SiLU (activation stays in VMEM) ----
    acc = conv(act, wT_ref=w1_ref, slab_ref=slab1)
    y = acc * sb1_ref[:, 0:1] + sb1_ref[:, 1:2]
    a0 = y * jax.nn.sigmoid(y)
    b0_ref[0] = a0.astype(b0_ref.dtype)

    # --- blocks[1] ------------------------------------------------------------
    acc = conv(a0, wT_ref=w2_ref, slab_ref=slab2)
    y = acc * sb2_ref[:, 0:1] + sb2_ref[:, 1:2]
    b1_ref[0] = (y * jax.nn.sigmoid(y)).astype(b1_ref.dtype)


# ----------------------------------------------------------------------------
# Synthetic backend parameters (deterministic) and folding helpers
# ----------------------------------------------------------------------------
def _fold_bn(bn):
    scale = bn["gamma"] * jax.lax.rsqrt(bn["var"] + _BN_EPS)
    bias = bn["beta"] - bn["mean"] * scale
    return scale, bias


def _init_bn(key, c):
    k1, k2, k3, k4 = jax.random.split(key, 4)
    return {
        "gamma": 1.0 + 0.1 * jax.random.normal(k1, (c,), jnp.float32),
        "beta": 0.1 * jax.random.normal(k2, (c,), jnp.float32),
        "mean": 0.1 * jax.random.normal(k3, (c,), jnp.float32),
        "var": jnp.abs(jax.random.normal(k4, (c,), jnp.float32)) + 0.5,
    }


def init_params(key, c_in=4, c_stem=16, c_block=(16, 24)):
    ks = jax.random.split(key, 8)
    params = {
        "stem_w": 0.1 * jax.random.normal(ks[0], (3, 3, c_in, c_stem), jnp.float32),
        "bn1": _init_bn(ks[1], c_stem),
        "blocks": [],
    }
    c_prev = c_stem
    for i, c_out in enumerate(c_block):
        params["blocks"].append({
            "w": 0.1 * jax.random.normal(ks[2 + 2 * i], (3, 3, c_prev, c_out),
                                         jnp.float32),
            "bn": _init_bn(ks[3 + 2 * i], c_out),
        })
        c_prev = c_out
    return params


# ----------------------------------------------------------------------------
# Encoder forward (mirrors Encoder.forward feature list)
# ----------------------------------------------------------------------------
def encoder_forward(params, x_nchw):
    """Returns [x, conv_stem(x), bn1(.), act1(.), block0(.), block1(.)] in NCHW."""
    N, Cin, H, W = x_nchw.shape
    HW = H * W

    w0 = params["stem_w"]                           # (KH, KW, Cin, Cstem) HWIO
    KH, KW, _, Cstem = w0.shape
    w1 = params["blocks"][0]["w"]
    w2 = params["blocks"][1]["w"]
    Cb0, Cb1 = w1.shape[-1], w2.shape[-1]

    # TODO(synk): training-mode batch statistics are not implemented; eval-mode
    # (running-stat) BatchNorm semantics are used.
    s0, t0 = _fold_bn(params["bn1"])
    s1, t1 = _fold_bn(params["blocks"][0]["bn"])
    s2, t2 = _fold_bn(params["blocks"][1]["bn"])

    # Channel-major / lane-dense operands: (N, Cin, H*W) input (free reshape of
    # NCHW), (Cout, K2) transposed bf16 weights, (Cout, 2) folded scale|bias.
    x = x_nchw.reshape(N, Cin, HW)
    w0T = w0.reshape(KH * KW * Cin, Cstem).T.astype(jnp.bfloat16)
    w1T = w1.reshape(KH * KW * Cstem, Cb0).T.astype(jnp.bfloat16)
    w2T = w2.reshape(KH * KW * Cb0, Cb1).T.astype(jnp.bfloat16)
    sb0 = jnp.stack([s0, t0], axis=1).astype(jnp.float32)
    sb1 = jnp.stack([s1, t1], axis=1).astype(jnp.float32)
    sb2 = jnp.stack([s2, t2], axis=1).astype(jnp.float32)
    masks = _make_shift_masks(H, W, KH, KW)

    kern = functools.partial(_encoder_kernel, H=H, W=W, KH=KH, KW=KW)

    chans = (Cstem, Cstem, Cstem, Cb0, Cb1)
    out_shape = tuple(jax.ShapeDtypeStruct((N, c, HW), x_nchw.dtype)
                      for c in chans)
    out_specs = tuple(pl.BlockSpec((1, c, HW), lambda n: (n, 0, 0))
                      for c in chans)

    flops = 2 * N * HW * (KH * KW) * (Cin * Cstem + Cstem * Cb0 + Cb0 * Cb1)
    transc = N * HW * (Cstem + Cb0 + Cb1)
    bytes_acc = (4 * N * HW * (Cin + sum(chans))
                 + 2 * (w0T.size + w1T.size + w2T.size) + 4 * masks.size)

    outs = pl.pallas_call(
        kern,
        out_shape=out_shape,
        grid_spec=pltpu.PrefetchScalarGridSpec(
            num_scalar_prefetch=0,
            grid=(N,),
            in_specs=[
                pl.BlockSpec((1, Cin, HW), lambda n: (n, 0, 0)),
                pl.BlockSpec((KH * KW, HW), lambda n: (0, 0)),
                pl.BlockSpec((Cstem, KH * KW * Cin), lambda n: (0, 0)),
                pl.BlockSpec((Cstem, 2), lambda n: (0, 0)),
                pl.BlockSpec((Cb0, KH * KW * Cstem), lambda n: (0, 0)),
                pl.BlockSpec((Cb0, 2), lambda n: (0, 0)),
                pl.BlockSpec((Cb1, KH * KW * Cb0), lambda n: (0, 0)),
                pl.BlockSpec((Cb1, 2), lambda n: (0, 0)),
            ],
            out_specs=out_specs,
            scratch_shapes=[
                pltpu.VMEM((KH * KW * Cin, HW), jnp.bfloat16),   # stem slab
                pltpu.VMEM((KH * KW * Cstem, HW), jnp.bfloat16), # block0 slab
                pltpu.VMEM((KH * KW * Cb0, HW), jnp.bfloat16),   # block1 slab
            ],
        ),
        compiler_params=pltpu.CompilerParams(
            dimension_semantics=("parallel",)),
        cost_estimate=pl.CostEstimate(flops=flops, transcendentals=transc,
                                      bytes_accessed=bytes_acc),
    )(x, masks, w0T, sb0, w1T, sb1, w2T, sb2)

    # Kernel already emits channel-major (N, C, H*W): NCHW is a free reshape.
    return [x_nchw] + [o.reshape(N, o.shape[1], H, W) for o in outs]


# ----------------------------------------------------------------------------
# Pure-JAX reference (same numerics: bf16 MXU inputs, f32 accumulation)
# ----------------------------------------------------------------------------
def encoder_reference(params, x_nchw):
    x = jnp.transpose(x_nchw, (0, 2, 3, 1))
    feats = [x]

    def conv(x, w):
        return jax.lax.conv_general_dilated(
            x.astype(jnp.bfloat16), w.astype(jnp.bfloat16), (1, 1), "SAME",
            dimension_numbers=("NHWC", "HWIO", "NHWC"),
            preferred_element_type=jnp.float32)

    feats.append(conv(feats[-1], params["stem_w"]))
    s, b = _fold_bn(params["bn1"])
    feats.append(feats[-1] * s + b)
    feats.append(feats[-1] * jax.nn.sigmoid(feats[-1]))
    for blk in params["blocks"]:
        s, b = _fold_bn(blk["bn"])
        y = conv(feats[-1], blk["w"]) * s + b
        feats.append(y * jax.nn.sigmoid(y))
    return [jnp.transpose(f, (0, 3, 1, 2)) for f in feats]


if __name__ == "__main__":
    key = jax.random.PRNGKey(0)
    kx, kp = jax.random.split(key)

    # Input in PyTorch NCHW layout.
    x = jax.random.normal(kx, (2, 4, 16, 16), jnp.float32)
    params = init_params(kp)

    feats = jax.jit(encoder_forward)(params, x)
    feats = [jax.block_until_ready(f) for f in feats]

    refs = encoder_reference(params, x)
    assert len(feats) == len(refs) == 6
    for i, (f, r) in enumerate(zip(feats, refs)):
        assert f.shape == r.shape, (i, f.shape, r.shape)
        err = jnp.max(jnp.abs(f - r))
        assert jnp.allclose(f, r, atol=1e-2, rtol=1e-2), (
            f"feature {i} mismatch: max err {err}")

    print("KERNEL_OK")
</pallas_src>

<mosaic_0001>
module attributes {stable_mosaic.version = 11 : i64} {
  func.func @_encoder_kernel(%arg0: i32, %arg1: memref<1x4x256xf32, #tpu.memory_space<vmem>>, %arg2: memref<9x256xf32, #tpu.memory_space<vmem>>, %arg3: memref<16x36xbf16, #tpu.memory_space<vmem>>, %arg4: memref<16x2xf32, #tpu.memory_space<vmem>>, %arg5: memref<16x144xbf16, #tpu.memory_space<vmem>>, %arg6: memref<16x2xf32, #tpu.memory_space<vmem>>, %arg7: memref<24x144xbf16, #tpu.memory_space<vmem>>, %arg8: memref<24x2xf32, #tpu.memory_space<vmem>>, %arg9: memref<1x16x256xf32, #tpu.memory_space<vmem>>, %arg10: memref<1x16x256xf32, #tpu.memory_space<vmem>>, %arg11: memref<1x16x256xf32, #tpu.memory_space<vmem>>, %arg12: memref<1x16x256xf32, #tpu.memory_space<vmem>>, %arg13: memref<1x24x256xf32, #tpu.memory_space<vmem>>, %arg14: memref<36x256xbf16, #tpu.memory_space<vmem>>, %arg15: memref<144x256xbf16, #tpu.memory_space<vmem>>, %arg16: memref<144x256xbf16, #tpu.memory_space<vmem>>) attributes {dimension_semantics = [#tpu.dimension_semantics<parallel>], iteration_bounds = array<i64: 2>, scalar_prefetch = 0 : i64, scratch_operands = 3 : i64, tpu.core_type = #tpu.core_type<tc>, window_params = [{transform_indices = @transform_0, window_bounds = array<i64: 1, 4, 256>}, {pipeline_mode = #tpu.pipeline_mode<synchronous>, transform_indices = @transform_1, window_bounds = array<i64: 9, 256>}, {pipeline_mode = #tpu.pipeline_mode<synchronous>, transform_indices = @transform_2, window_bounds = array<i64: 16, 36>}, {pipeline_mode = #tpu.pipeline_mode<synchronous>, transform_indices = @transform_3, window_bounds = array<i64: 16, 2>}, {pipeline_mode = #tpu.pipeline_mode<synchronous>, transform_indices = @transform_4, window_bounds = array<i64: 16, 144>}, {pipeline_mode = #tpu.pipeline_mode<synchronous>, transform_indices = @transform_5, window_bounds = array<i64: 16, 2>}, {pipeline_mode = #tpu.pipeline_mode<synchronous>, transform_indices = @transform_6, window_bounds = array<i64: 24, 144>}, {pipeline_mode = #tpu.pipeline_mode<synchronous>, transform_indices = @transform_7, window_bounds = array<i64: 24, 2>}, {transform_indices = @transform_8, window_bounds = array<i64: 1, 16, 256>}, {transform_indices = @transform_9, window_bounds = array<i64: 1, 16, 256>}, {transform_indices = @transform_10, window_bounds = array<i64: 1, 16, 256>}, {transform_indices = @transform_11, window_bounds = array<i64: 1, 16, 256>}, {transform_indices = @transform_12, window_bounds = array<i64: 1, 24, 256>}]} {
    %c0 = arith.constant 0 : index
    %c0_0 = arith.constant 0 : index
    %c0_1 = arith.constant 0 : index
    %0 = vector.load %arg1[%c0, %c0_0, %c0_1] : memref<1x4x256xf32, #tpu.memory_space<vmem>>, vector<1x4x256xf32>
    %1 = vector.shape_cast %0 : vector<1x4x256xf32> to vector<4x256xf32>
    %c17_i32 = arith.constant 17 : i32
    %2 = tpu.dynamic_rotate %1 by %c17_i32 dim 1 : vector<4x256xf32>, i32 -> vector<4x256xf32>
    %c0_2 = arith.constant 0 : index
    %c0_3 = arith.constant 0 : index
    %3 = vector.load %arg2[%c0_2, %c0_3] : memref<9x256xf32, #tpu.memory_space<vmem>>, vector<1x256xf32>
    %4 = vector.broadcast %3 : vector<1x256xf32> to vector<4x256xf32>
    %5 = arith.mulf %2, %4 : vector<4x256xf32>
    %6 = arith.truncf %5 : vector<4x256xf32> to vector<4x256xbf16>
    %c0_4 = arith.constant 0 : index
    %c0_5 = arith.constant 0 : index
    %7 = vector.load %arg14[%c0_4, %c0_5] : memref<36x256xbf16, #tpu.memory_space<vmem>>, vector<4x256xbf16>
    tpu.vector_store %arg14[%c0_4, %c0_5], %6 {strides = array<i32>} : memref<36x256xbf16, #tpu.memory_space<vmem>>, vector<4x256xbf16>,
    %c16_i32 = arith.constant 16 : i32
    %8 = tpu.dynamic_rotate %1 by %c16_i32 dim 1 : vector<4x256xf32>, i32 -> vector<4x256xf32>
    %c1 = arith.constant 1 : index
    %c0_6 = arith.constant 0 : index
    %9 = vector.load %arg2[%c1, %c0_6] : memref<9x256xf32, #tpu.memory_space<vmem>>, vector<1x256xf32>
    %10 = vector.broadcast %9 : vector<1x256xf32> to vector<4x256xf32>
    %11 = arith.mulf %8, %10 : vector<4x256xf32>
    %12 = arith.truncf %11 : vector<4x256xf32> to vector<4x256xbf16>
    %c4 = arith.constant 4 : index
    %c0_7 = arith.constant 0 : index
    %13 = vector.load %arg14[%c4, %c0_7] : memref<36x256xbf16, #tpu.memory_space<vmem>>, vector<4x256xbf16>
    tpu.vector_store %arg14[%c4, %c0_7], %12 {strides = array<i32>} : memref<36x256xbf16, #tpu.memory_space<vmem>>, vector<4x256xbf16>,
    %c15_i32 = arith.constant 15 : i32
    %14 = tpu.dynamic_rotate %1 by %c15_i32 dim 1 : vector<4x256xf32>, i32 -> vector<4x256xf32>
    %c2 = arith.constant 2 : index
    %c0_8 = arith.constant 0 : index
    %15 = vector.load %arg2[%c2, %c0_8] : memref<9x256xf32, #tpu.memory_space<vmem>>, vector<1x256xf32>
    %16 = vector.broadcast %15 : vector<1x256xf32> to vector<4x256xf32>
    %17 = arith.mulf %14, %16 : vector<4x256xf32>
    %18 = arith.truncf %17 : vector<4x256xf32> to vector<4x256xbf16>
    %c8 = arith.constant 8 : index
    %c0_9 = arith.constant 0 : index
    %19 = vector.load %arg14[%c8, %c0_9] : memref<36x256xbf16, #tpu.memory_space<vmem>>, vector<4x256xbf16>
    tpu.vector_store %arg14[%c8, %c0_9], %18 {strides = array<i32>} : memref<36x256xbf16, #tpu.memory_space<vmem>>, vector<4x256xbf16>,
    %c1_i32 = arith.constant 1 : i32
    %20 = tpu.dynamic_rotate %1 by %c1_i32 dim 1 : vector<4x256xf32>, i32 -> vector<4x256xf32>
    %c3 = arith.constant 3 : index
    %c0_10 = arith.constant 0 : index
    %21 = vector.load %arg2[%c3, %c0_10] : memref<9x256xf32, #tpu.memory_space<vmem>>, vector<1x256xf32>
    %22 = vector.broadcast %21 : vector<1x256xf32> to vector<4x256xf32>
    %23 = arith.mulf %20, %22 : vector<4x256xf32>
    %24 = arith.truncf %23 : vector<4x256xf32> to vector<4x256xbf16>
    %c12 = arith.constant 12 : index
    %c0_11 = arith.constant 0 : index
    %25 = vector.load %arg14[%c12, %c0_11] : memref<36x256xbf16, #tpu.memory_space<vmem>>, vector<4x256xbf16>
    tpu.vector_store %arg14[%c12, %c0_11], %24 {strides = array<i32>} : memref<36x256xbf16, #tpu.memory_space<vmem>>, vector<4x256xbf16>,
    %c4_12 = arith.constant 4 : index
    %c0_13 = arith.constant 0 : index
    %26 = vector.load %arg2[%c4_12, %c0_13] : memref<9x256xf32, #tpu.memory_space<vmem>>, vector<1x256xf32>
    %27 = vector.broadcast %26 : vector<1x256xf32> to vector<4x256xf32>
    %28 = arith.mulf %1, %27 : vector<4x256xf32>
    %29 = arith.truncf %28 : vector<4x256xf32> to vector<4x256xbf16>
    %c16 = arith.constant 16 : index
    %c0_14 = arith.constant 0 : index
    %30 = vector.load %arg14[%c16, %c0_14] : memref<36x256xbf16, #tpu.memory_space<vmem>>, vector<4x256xbf16>
    tpu.vector_store %arg14[%c16, %c0_14], %29 {strides = array<i32>} : memref<36x256xbf16, #tpu.memory_space<vmem>>, vector<4x256xbf16>,
    %c255_i32 = arith.constant 255 : i32
    %31 = tpu.dynamic_rotate %1 by %c255_i32 dim 1 : vector<4x256xf32>, i32 -> vector<4x256xf32>
    %c5 = arith.constant 5 : index
    %c0_15 = arith.constant 0 : index
    %32 = vector.load %arg2[%c5, %c0_15] : memref<9x256xf32, #tpu.memory_space<vmem>>, vector<1x256xf32>
    %33 = vector.broadcast %32 : vector<1x256xf32> to vector<4x256xf32>
    %34 = arith.mulf %31, %33 : vector<4x256xf32>
    %35 = arith.truncf %34 : vector<4x256xf32> to vector<4x256xbf16>
    %c20 = arith.constant 20 : index
    %c0_16 = arith.constant 0 : index
    %36 = vector.load %arg14[%c20, %c0_16] : memref<36x256xbf16, #tpu.memory_space<vmem>>, vector<4x256xbf16>
    tpu.vector_store %arg14[%c20, %c0_16], %35 {strides = array<i32>} : memref<36x256xbf16, #tpu.memory_space<vmem>>, vector<4x256xbf16>,
    %c241_i32 = arith.constant 241 : i32
    %37 = tpu.dynamic_rotate %1 by %c241_i32 dim 1 : vector<4x256xf32>, i32 -> vector<4x256xf32>
    %c6 = arith.constant 6 : index
    %c0_17 = arith.constant 0 : index
    %38 = vector.load %arg2[%c6, %c0_17] : memref<9x256xf32, #tpu.memory_space<vmem>>, vector<1x256xf32>
    %39 = vector.broadcast %38 : vector<1x256xf32> to vector<4x256xf32>
    %40 = arith.mulf %37, %39 : vector<4x256xf32>
    %41 = arith.truncf %40 : vector<4x256xf32> to vector<4x256xbf16>
    %c24 = arith.constant 24 : index
    %c0_18 = arith.constant 0 : index
    %42 = vector.load %arg14[%c24, %c0_18] : memref<36x256xbf16, #tpu.memory_space<vmem>>, vector<4x256xbf16>
    tpu.vector_store %arg14[%c24, %c0_18], %41 {strides = array<i32>} : memref<36x256xbf16, #tpu.memory_space<vmem>>, vector<4x256xbf16>,
    %c240_i32 = arith.constant 240 : i32
    %43 = tpu.dynamic_rotate %1 by %c240_i32 dim 1 : vector<4x256xf32>, i32 -> vector<4x256xf32>
    %c7 = arith.constant 7 : index
    %c0_19 = arith.constant 0 : index
    %44 = vector.load %arg2[%c7, %c0_19] : memref<9x256xf32, #tpu.memory_space<vmem>>, vector<1x256xf32>
    %45 = vector.broadcast %44 : vector<1x256xf32> to vector<4x256xf32>
    %46 = arith.mulf %43, %45 : vector<4x256xf32>
    %47 = arith.truncf %46 : vector<4x256xf32> to vector<4x256xbf16>
    %c28 = arith.constant 28 : index
    %c0_20 = arith.constant 0 : index
    %48 = vector.load %arg14[%c28, %c0_20] : memref<36x256xbf16, #tpu.memory_space<vmem>>, vector<4x256xbf16>
    tpu.vector_store %arg14[%c28, %c0_20], %47 {strides = array<i32>} : memref<36x256xbf16, #tpu.memory_space<vmem>>, vector<4x256xbf16>,
    %c239_i32 = arith.constant 239 : i32
    %49 = tpu.dynamic_rotate %1 by %c239_i32 dim 1 : vector<4x256xf32>, i32 -> vector<4x256xf32>
    %c8_21 = arith.constant 8 : index
    %c0_22 = arith.constant 0 : index
    %50 = vector.load %arg2[%c8_21, %c0_22] : memref<9x256xf32, #tpu.memory_space<vmem>>, vector<1x256xf32>
    %51 = vector.broadcast %50 : vector<1x256xf32> to vector<4x256xf32>
    %52 = arith.mulf %49, %51 : vector<4x256xf32>
    %53 = arith.truncf %52 : vector<4x256xf32> to vector<4x256xbf16>
    %c32 = arith.constant 32 : index
    %c0_23 = arith.constant 0 : index
    %54 = vector.load %arg14[%c32, %c0_23] : memref<36x256xbf16, #tpu.memory_space<vmem>>, vector<4x256xbf16>
    tpu.vector_store %arg14[%c32, %c0_23], %53 {strides = array<i32>} : memref<36x256xbf16, #tpu.memory_space<vmem>>, vector<4x256xbf16>,
    %c0_24 = arith.constant 0 : index
    %c0_25 = arith.constant 0 : index
    %55 = vector.load %arg3[%c0_24, %c0_25] : memref<16x36xbf16, #tpu.memory_space<vmem>>, vector<16x36xbf16>
    %c0_26 = arith.constant 0 : index
    %c0_27 = arith.constant 0 : index
    %56 = vector.load %arg14[%c0_26, %c0_27] : memref<36x256xbf16, #tpu.memory_space<vmem>>, vector<36x256xbf16>
    %cst = arith.constant dense<0.000000e+00> : vector<16x256xf32>
    %57 = tpu.matmul %55, %56, %cst {dimension_numbers = #tpu.dot_dimension_numbers<[1], [0], [0], [1], [0, 0, 1, 1], [], []>} : vector<16x36xbf16>, vector<36x256xbf16>, vector<16x256xf32> -> vector<16x256xf32>
    %c0_28 = arith.constant 0 : index
    %c0_29 = arith.constant 0 : index
    %c0_30 = arith.constant 0 : index
    %58 = vector.load %arg9[%c0_28, %c0_29, %c0_30] : memref<1x16x256xf32, #tpu.memory_space<vmem>>, vector<1x16x256xf32>
    %59 = vector.shape_cast %58 : vector<1x16x256xf32> to vector<16x256xf32>
    %60 = vector.shape_cast %57 : vector<16x256xf32> to vector<1x16x256xf32>
    tpu.vector_store %arg9[%c0_28, %c0_29, %c0_30], %60 {strides = array<i32>} : memref<1x16x256xf32, #tpu.memory_space<vmem>>, vector<1x16x256xf32>,
    %c0_31 = arith.constant 0 : index
    %c0_32 = arith.constant 0 : index
    %61 = vector.load %arg4[%c0_31, %c0_32] : memref<16x2xf32, #tpu.memory_space<vmem>>, vector<16x1xf32>
    %62 = vector.broadcast %61 : vector<16x1xf32> to vector<16x256xf32>
    %63 = arith.mulf %57, %62 : vector<16x256xf32>
    %c0_33 = arith.constant 0 : index
    %c1_34 = arith.constant 1 : index
    %64 = vector.load %arg4[%c0_33, %c1_34] : memref<16x2xf32, #tpu.memory_space<vmem>>, vector<16x1xf32>
    %65 = vector.broadcast %64 : vector<16x1xf32> to vector<16x256xf32>
    %66 = arith.addf %63, %65 : vector<16x256xf32>
    %c0_35 = arith.constant 0 : index
    %c0_36 = arith.constant 0 : index
    %c0_37 = arith.constant 0 : index
    %67 = vector.load %arg10[%c0_35, %c0_36, %c0_37] : memref<1x16x256xf32, #tpu.memory_space<vmem>>, vector<1x16x256xf32>
    %68 = vector.shape_cast %67 : vector<1x16x256xf32> to vector<16x256xf32>
    %69 = vector.shape_cast %66 : vector<16x256xf32> to vector<1x16x256xf32>
    tpu.vector_store %arg10[%c0_35, %c0_36, %c0_37], %69 {strides = array<i32>} : memref<1x16x256xf32, #tpu.memory_space<vmem>>, vector<1x16x256xf32>,
    %70 = arith.negf %66 : vector<16x256xf32>
    %71 = math.exp %70 : vector<16x256xf32>
    %cst_38 = arith.constant 1.000000e+00 : f32
    %72 = vector.broadcast %cst_38 : f32 to vector<16x256xf32>
    %73 = arith.addf %72, %71 : vector<16x256xf32>
    %74 = arith.divf %72, %73 : vector<16x256xf32>
    %75 = arith.mulf %66, %74 : vector<16x256xf32>
    %c0_39 = arith.constant 0 : index
    %c0_40 = arith.constant 0 : index
    %c0_41 = arith.constant 0 : index
    %76 = vector.load %arg11[%c0_39, %c0_40, %c0_41] : memref<1x16x256xf32, #tpu.memory_space<vmem>>, vector<1x16x256xf32>
    %77 = vector.shape_cast %76 : vector<1x16x256xf32> to vector<16x256xf32>
    %78 = vector.shape_cast %75 : vector<16x256xf32> to vector<1x16x256xf32>
    tpu.vector_store %arg11[%c0_39, %c0_40, %c0_41], %78 {strides = array<i32>} : memref<1x16x256xf32, #tpu.memory_space<vmem>>, vector<1x16x256xf32>,
    %c17_i32_42 = arith.constant 17 : i32
    %79 = tpu.dynamic_rotate %75 by %c17_i32_42 dim 1 : vector<16x256xf32>, i32 -> vector<16x256xf32>
    %c0_43 = arith.constant 0 : index
    %c0_44 = arith.constant 0 : index
    %80 = vector.load %arg2[%c0_43, %c0_44] : memref<9x256xf32, #tpu.memory_space<vmem>>, vector<1x256xf32>
    %81 = vector.broadcast %80 : vector<1x256xf32> to vector<16x256xf32>
    %82 = arith.mulf %79, %81 : vector<16x256xf32>
    %83 = arith.truncf %82 : vector<16x256xf32> to vector<16x256xbf16>
    %c0_45 = arith.constant 0 : index
    %c0_46 = arith.constant 0 : index
    %84 = vector.load %arg15[%c0_45, %c0_46] : memref<144x256xbf16, #tpu.memory_space<vmem>>, vector<16x256xbf16>
    tpu.vector_store %arg15[%c0_45, %c0_46], %83 {strides = array<i32>} : memref<144x256xbf16, #tpu.memory_space<vmem>>, vector<16x256xbf16>,
    %c16_i32_47 = arith.constant 16 : i32
    %85 = tpu.dynamic_rotate %75 by %c16_i32_47 dim 1 : vector<16x256xf32>, i32 -> vector<16x256xf32>
    %c1_48 = arith.constant 1 : index
    %c0_49 = arith.constant 0 : index
    %86 = vector.load %arg2[%c1_48, %c0_49] : memref<9x256xf32, #tpu.memory_space<vmem>>, vector<1x256xf32>
    %87 = vector.broadcast %86 : vector<1x256xf32> to vector<16x256xf32>
    %88 = arith.mulf %85, %87 : vector<16x256xf32>
    %89 = arith.truncf %88 : vector<16x256xf32> to vector<16x256xbf16>
    %c16_50 = arith.constant 16 : index
    %c0_51 = arith.constant 0 : index
    %90 = vector.load %arg15[%c16_50, %c0_51] : memref<144x256xbf16, #tpu.memory_space<vmem>>, vector<16x256xbf16>
    tpu.vector_store %arg15[%c16_50, %c0_51], %89 {strides = array<i32>} : memref<144x256xbf16, #tpu.memory_space<vmem>>, vector<16x256xbf16>,
    %c15_i32_52 = arith.constant 15 : i32
    %91 = tpu.dynamic_rotate %75 by %c15_i32_52 dim 1 : vector<16x256xf32>, i32 -> vector<16x256xf32>
    %c2_53 = arith.constant 2 : index
    %c0_54 = arith.constant 0 : index
    %92 = vector.load %arg2[%c2_53, %c0_54] : memref<9x256xf32, #tpu.memory_space<vmem>>, vector<1x256xf32>
    %93 = vector.broadcast %92 : vector<1x256xf32> to vector<16x256xf32>
    %94 = arith.mulf %91, %93 : vector<16x256xf32>
    %95 = arith.truncf %94 : vector<16x256xf32> to vector<16x256xbf16>
    %c32_55 = arith.constant 32 : index
    %c0_56 = arith.constant 0 : index
    %96 = vector.load %arg15[%c32_55, %c0_56] : memref<144x256xbf16, #tpu.memory_space<vmem>>, vector<16x256xbf16>
    tpu.vector_store %arg15[%c32_55, %c0_56], %95 {strides = array<i32>} : memref<144x256xbf16, #tpu.memory_space<vmem>>, vector<16x256xbf16>,
    %c1_i32_57 = arith.constant 1 : i32
    %97 = tpu.dynamic_rotate %75 by %c1_i32_57 dim 1 : vector<16x256xf32>, i32 -> vector<16x256xf32>
    %c3_58 = arith.constant 3 : index
    %c0_59 = arith.constant 0 : index
    %98 = vector.load %arg2[%c3_58, %c0_59] : memref<9x256xf32, #tpu.memory_space<vmem>>, vector<1x256xf32>
    %99 = vector.broadcast %98 : vector<1x256xf32> to vector<16x256xf32>
    %100 = arith.mulf %97, %99 : vector<16x256xf32>
    %101 = arith.truncf %100 : vector<16x256xf32> to vector<16x256xbf16>
    %c48 = arith.constant 48 : index
    %c0_60 = arith.constant 0 : index
    %102 = vector.load %arg15[%c48, %c0_60] : memref<144x256xbf16, #tpu.memory_space<vmem>>, vector<16x256xbf16>
    tpu.vector_store %arg15[%c48, %c0_60], %101 {strides = array<i32>} : memref<144x256xbf16, #tpu.memory_space<vmem>>, vector<16x256xbf16>,
    %c4_61 = arith.constant 4 : index
    %c0_62 = arith.constant 0 : index
    %103 = vector.load %arg2[%c4_61, %c0_62] : memref<9x256xf32, #tpu.memory_space<vmem>>, vector<1x256xf32>
    %104 = vector.broadcast %103 : vector<1x256xf32> to vector<16x256xf32>
    %105 = arith.mulf %75, %104 : vector<16x256xf32>
    %106 = arith.truncf %105 : vector<16x256xf32> to vector<16x256xbf16>
    %c64 = arith.constant 64 : index
    %c0_63 = arith.constant 0 : index
    %107 = vector.load %arg15[%c64, %c0_63] : memref<144x256xbf16, #tpu.memory_space<vmem>>, vector<16x256xbf16>
    tpu.vector_store %arg15[%c64, %c0_63], %106 {strides = array<i32>} : memref<144x256xbf16, #tpu.memory_space<vmem>>, vector<16x256xbf16>,
    %c255_i32_64 = arith.constant 255 : i32
    %108 = tpu.dynamic_rotate %75 by %c255_i32_64 dim 1 : vector<16x256xf32>, i32 -> vector<16x256xf32>
    %c5_65 = arith.constant 5 : index
    %c0_66 = arith.constant 0 : index
    %109 = vector.load %arg2[%c5_65, %c0_66] : memref<9x256xf32, #tpu.memory_space<vmem>>, vector<1x256xf32>
    %110 = vector.broadcast %109 : vector<1x256xf32> to vector<16x256xf32>
    %111 = arith.mulf %108, %110 : vector<16x256xf32>
    %112 = arith.truncf %111 : vector<16x256xf32> to vector<16x256xbf16>
    %c80 = arith.constant 80 : index
    %c0_67 = arith.constant 0 : index
    %113 = vector.load %arg15[%c80, %c0_67] : memref<144x256xbf16, #tpu.memory_space<vmem>>, vector<16x256xbf16>
    tpu.vector_store %arg15[%c80, %c0_67], %112 {strides = array<i32>} : memref<144x256xbf16, #tpu.memory_space<vmem>>, vector<16x256xbf16>,
    %c241_i32_68 = arith.constant 241 : i32
    %114 = tpu.dynamic_rotate %75 by %c241_i32_68 dim 1 : vector<16x256xf32>, i32 -> vector<16x256xf32>
    %c6_69 = arith.constant 6 : index
    %c0_70 = arith.constant 0 : index
    %115 = vector.load %arg2[%c6_69, %c0_70] : memref<9x256xf32, #tpu.memory_space<vmem>>, vector<1x256xf32>
    %116 = vector.broadcast %115 : vector<1x256xf32> to vector<16x256xf32>
    %117 = arith.mulf %114, %116 : vector<16x256xf32>
    %118 = arith.truncf %117 : vector<16x256xf32> to vector<16x256xbf16>
    %c96 = arith.constant 96 : index
    %c0_71 = arith.constant 0 : index
    %119 = vector.load %arg15[%c96, %c0_71] : memref<144x256xbf16, #tpu.memory_space<vmem>>, vector<16x256xbf16>
    tpu.vector_store %arg15[%c96, %c0_71], %118 {strides = array<i32>} : memref<144x256xbf16, #tpu.memory_space<vmem>>, vector<16x256xbf16>,
    %c240_i32_72 = arith.constant 240 : i32
    %120 = tpu.dynamic_rotate %75 by %c240_i32_72 dim 1 : vector<16x256xf32>, i32 -> vector<16x256xf32>
    %c7_73 = arith.constant 7 : index
    %c0_74 = arith.constant 0 : index
    %121 = vector.load %arg2[%c7_73, %c0_74] : memref<9x256xf32, #tpu.memory_space<vmem>>, vector<1x256xf32>
    %122 = vector.broadcast %121 : vector<1x256xf32> to vector<16x256xf32>
    %123 = arith.mulf %120, %122 : vector<16x256xf32>
    %124 = arith.truncf %123 : vector<16x256xf32> to vector<16x256xbf16>
    %c112 = arith.constant 112 : index
    %c0_75 = arith.constant 0 : index
    %125 = vector.load %arg15[%c112, %c0_75] : memref<144x256xbf16, #tpu.memory_space<vmem>>, vector<16x256xbf16>
    tpu.vector_store %arg15[%c112, %c0_75], %124 {strides = array<i32>} : memref<144x256xbf16, #tpu.memory_space<vmem>>, vector<16x256xbf16>,
    %c239_i32_76 = arith.constant 239 : i32
    %126 = tpu.dynamic_rotate %75 by %c239_i32_76 dim 1 : vector<16x256xf32>, i32 -> vector<16x256xf32>
    %c8_77 = arith.constant 8 : index
    %c0_78 = arith.constant 0 : index
    %127 = vector.load %arg2[%c8_77, %c0_78] : memref<9x256xf32, #tpu.memory_space<vmem>>, vector<1x256xf32>
    %128 = vector.broadcast %127 : vector<1x256xf32> to vector<16x256xf32>
    %129 = arith.mulf %126, %128 : vector<16x256xf32>
    %130 = arith.truncf %129 : vector<16x256xf32> to vector<16x256xbf16>
    %c128 = arith.constant 128 : index
    %c0_79 = arith.constant 0 : index
    %131 = vector.load %arg15[%c128, %c0_79] : memref<144x256xbf16, #tpu.memory_space<vmem>>, vector<16x256xbf16>
    tpu.vector_store %arg15[%c128, %c0_79], %130 {strides = array<i32>} : memref<144x256xbf16, #tpu.memory_space<vmem>>, vector<16x256xbf16>,
    %c0_80 = arith.constant 0 : index
    %c0_81 = arith.constant 0 : index
    %132 = vector.load %arg5[%c0_80, %c0_81] : memref<16x144xbf16, #tpu.memory_space<vmem>>, vector<16x144xbf16>
    %c0_82 = arith.constant 0 : index
    %c0_83 = arith.constant 0 : index
    %133 = vector.load %arg15[%c0_82, %c0_83] : memref<144x256xbf16, #tpu.memory_space<vmem>>, vector<144x256xbf16>
    %cst_84 = arith.constant dense<0.000000e+00> : vector<16x256xf32>
    %134 = tpu.matmul %132, %133, %cst_84 {dimension_numbers = #tpu.dot_dimension_numbers<[1], [0], [0], [1], [0, 0, 1, 1], [], []>} : vector<16x144xbf16>, vector<144x256xbf16>, vector<16x256xf32> -> vector<16x256xf32>
    %c0_85 = arith.constant 0 : index
    %c0_86 = arith.constant 0 : index
    %135 = vector.load %arg6[%c0_85, %c0_86] : memref<16x2xf32, #tpu.memory_space<vmem>>, vector<16x1xf32>
    %136 = vector.broadcast %135 : vector<16x1xf32> to vector<16x256xf32>
    %137 = arith.mulf %134, %136 : vector<16x256xf32>
    %c0_87 = arith.constant 0 : index
    %c1_88 = arith.constant 1 : index
    %138 = vector.load %arg6[%c0_87, %c1_88] : memref<16x2xf32, #tpu.memory_space<vmem>>, vector<16x1xf32>
    %139 = vector.broadcast %138 : vector<16x1xf32> to vector<16x256xf32>
    %140 = arith.addf %137, %139 : vector<16x256xf32>
    %141 = arith.negf %140 : vector<16x256xf32>
    %142 = math.exp %141 : vector<16x256xf32>
    %cst_89 = arith.constant 1.000000e+00 : f32
    %143 = vector.broadcast %cst_89 : f32 to vector<16x256xf32>
    %144 = arith.addf %143, %142 : vector<16x256xf32>
    %145 = arith.divf %143, %144 : vector<16x256xf32>
    %146 = arith.mulf %140, %145 : vector<16x256xf32>
    %c0_90 = arith.constant 0 : index
    %c0_91 = arith.constant 0 : index
    %c0_92 = arith.constant 0 : index
    %147 = vector.load %arg12[%c0_90, %c0_91, %c0_92] : memref<1x16x256xf32, #tpu.memory_space<vmem>>, vector<1x16x256xf32>
    %148 = vector.shape_cast %147 : vector<1x16x256xf32> to vector<16x256xf32>
    %149 = vector.shape_cast %146 : vector<16x256xf32> to vector<1x16x256xf32>
    tpu.vector_store %arg12[%c0_90, %c0_91, %c0_92], %149 {strides = array<i32>} : memref<1x16x256xf32, #tpu.memory_space<vmem>>, vector<1x16x256xf32>,
    %c17_i32_93 = arith.constant 17 : i32
    %150 = tpu.dynamic_rotate %146 by %c17_i32_93 dim 1 : vector<16x256xf32>, i32 -> vector<16x256xf32>
    %c0_94 = arith.constant 0 : index
    %c0_95 = arith.constant 0 : index
    %151 = vector.load %arg2[%c0_94, %c0_95] : memref<9x256xf32, #tpu.memory_space<vmem>>, vector<1x256xf32>
    %152 = vector.broadcast %151 : vector<1x256xf32> to vector<16x256xf32>
    %153 = arith.mulf %150, %152 : vector<16x256xf32>
    %154 = arith.truncf %153 : vector<16x256xf32> to vector<16x256xbf16>
    %c0_96 = arith.constant 0 : index
    %c0_97 = arith.constant 0 : index
    %155 = vector.load %arg16[%c0_96, %c0_97] : memref<144x256xbf16, #tpu.memory_space<vmem>>, vector<16x256xbf16>
    tpu.vector_store %arg16[%c0_96, %c0_97], %154 {strides = array<i32>} : memref<144x256xbf16, #tpu.memory_space<vmem>>, vector<16x256xbf16>,
    %c16_i32_98 = arith.constant 16 : i32
    %156 = tpu.dynamic_rotate %146 by %c16_i32_98 dim 1 : vector<16x256xf32>, i32 -> vector<16x256xf32>
    %c1_99 = arith.constant 1 : index
    %c0_100 = arith.constant 0 : index
    %157 = vector.load %arg2[%c1_99, %c0_100] : memref<9x256xf32, #tpu.memory_space<vmem>>, vector<1x256xf32>
    %158 = vector.broadcast %157 : vector<1x256xf32> to vector<16x256xf32>
    %159 = arith.mulf %156, %158 : vector<16x256xf32>
    %160 = arith.truncf %159 : vector<16x256xf32> to vector<16x256xbf16>
    %c16_101 = arith.constant 16 : index
    %c0_102 = arith.constant 0 : index
    %161 = vector.load %arg16[%c16_101, %c0_102] : memref<144x256xbf16, #tpu.memory_space<vmem>>, vector<16x256xbf16>
    tpu.vector_store %arg16[%c16_101, %c0_102], %160 {strides = array<i32>} : memref<144x256xbf16, #tpu.memory_space<vmem>>, vector<16x256xbf16>,
    %c15_i32_103 = arith.constant 15 : i32
    %162 = tpu.dynamic_rotate %146 by %c15_i32_103 dim 1 : vector<16x256xf32>, i32 -> vector<16x256xf32>
    %c2_104 = arith.constant 2 : index
    %c0_105 = arith.constant 0 : index
    %163 = vector.load %arg2[%c2_104, %c0_105] : memref<9x256xf32, #tpu.memory_space<vmem>>, vector<1x256xf32>
    %164 = vector.broadcast %163 : vector<1x256xf32> to vector<16x256xf32>
    %165 = arith.mulf %162, %164 : vector<16x256xf32>
    %166 = arith.truncf %165 : vector<16x256xf32> to vector<16x256xbf16>
    %c32_106 = arith.constant 32 : index
    %c0_107 = arith.constant 0 : index
    %167 = vector.load %arg16[%c32_106, %c0_107] : memref<144x256xbf16, #tpu.memory_space<vmem>>, vector<16x256xbf16>
    tpu.vector_store %arg16[%c32_106, %c0_107], %166 {strides = array<i32>} : memref<144x256xbf16, #tpu.memory_space<vmem>>, vector<16x256xbf16>,
    %c1_i32_108 = arith.constant 1 : i32
    %168 = tpu.dynamic_rotate %146 by %c1_i32_108 dim 1 : vector<16x256xf32>, i32 -> vector<16x256xf32>
    %c3_109 = arith.constant 3 : index
    %c0_110 = arith.constant 0 : index
    %169 = vector.load %arg2[%c3_109, %c0_110] : memref<9x256xf32, #tpu.memory_space<vmem>>, vector<1x256xf32>
    %170 = vector.broadcast %169 : vector<1x256xf32> to vector<16x256xf32>
    %171 = arith.mulf %168, %170 : vector<16x256xf32>
    %172 = arith.truncf %171 : vector<16x256xf32> to vector<16x256xbf16>
    %c48_111 = arith.constant 48 : index
    %c0_112 = arith.constant 0 : index
    %173 = vector.load %arg16[%c48_111, %c0_112] : memref<144x256xbf16, #tpu.memory_space<vmem>>, vector<16x256xbf16>
    tpu.vector_store %arg16[%c48_111, %c0_112], %172 {strides = array<i32>} : memref<144x256xbf16, #tpu.memory_space<vmem>>, vector<16x256xbf16>,
    %c4_113 = arith.constant 4 : index
    %c0_114 = arith.constant 0 : index
    %174 = vector.load %arg2[%c4_113, %c0_114] : memref<9x256xf32, #tpu.memory_space<vmem>>, vector<1x256xf32>
    %175 = vector.broadcast %174 : vector<1x256xf32> to vector<16x256xf32>
    %176 = arith.mulf %146, %175 : vector<16x256xf32>
    %177 = arith.truncf %176 : vector<16x256xf32> to vector<16x256xbf16>
    %c64_115 = arith.constant 64 : index
    %c0_116 = arith.constant 0 : index
    %178 = vector.load %arg16[%c64_115, %c0_116] : memref<144x256xbf16, #tpu.memory_space<vmem>>, vector<16x256xbf16>
    tpu.vector_store %arg16[%c64_115, %c0_116], %177 {strides = array<i32>} : memref<144x256xbf16, #tpu.memory_space<vmem>>, vector<16x256xbf16>,
    %c255_i32_117 = arith.constant 255 : i32
    %179 = tpu.dynamic_rotate %146 by %c255_i32_117 dim 1 : vector<16x256xf32>, i32 -> vector<16x256xf32>
    %c5_118 = arith.constant 5 : index
    %c0_119 = arith.constant 0 : index
    %180 = vector.load %arg2[%c5_118, %c0_119] : memref<9x256xf32, #tpu.memory_space<vmem>>, vector<1x256xf32>
    %181 = vector.broadcast %180 : vector<1x256xf32> to vector<16x256xf32>
    %182 = arith.mulf %179, %181 : vector<16x256xf32>
    %183 = arith.truncf %182 : vector<16x256xf32> to vector<16x256xbf16>
    %c80_120 = arith.constant 80 : index
    %c0_121 = arith.constant 0 : index
    %184 = vector.load %arg16[%c80_120, %c0_121] : memref<144x256xbf16, #tpu.memory_space<vmem>>, vector<16x256xbf16>
    tpu.vector_store %arg16[%c80_120, %c0_121], %183 {strides = array<i32>} : memref<144x256xbf16, #tpu.memory_space<vmem>>, vector<16x256xbf16>,
    %c241_i32_122 = arith.constant 241 : i32
    %185 = tpu.dynamic_rotate %146 by %c241_i32_122 dim 1 : vector<16x256xf32>, i32 -> vector<16x256xf32>
    %c6_123 = arith.constant 6 : index
    %c0_124 = arith.constant 0 : index
    %186 = vector.load %arg2[%c6_123, %c0_124] : memref<9x256xf32, #tpu.memory_space<vmem>>, vector<1x256xf32>
    %187 = vector.broadcast %186 : vector<1x256xf32> to vector<16x256xf32>
    %188 = arith.mulf %185, %187 : vector<16x256xf32>
    %189 = arith.truncf %188 : vector<16x256xf32> to vector<16x256xbf16>
    %c96_125 = arith.constant 96 : index
    %c0_126 = arith.constant 0 : index
    %190 = vector.load %arg16[%c96_125, %c0_126] : memref<144x256xbf16, #tpu.memory_space<vmem>>, vector<16x256xbf16>
    tpu.vector_store %arg16[%c96_125, %c0_126], %189 {strides = array<i32>} : memref<144x256xbf16, #tpu.memory_space<vmem>>, vector<16x256xbf16>,
    %c240_i32_127 = arith.constant 240 : i32
    %191 = tpu.dynamic_rotate %146 by %c240_i32_127 dim 1 : vector<16x256xf32>, i32 -> vector<16x256xf32>
    %c7_128 = arith.constant 7 : index
    %c0_129 = arith.constant 0 : index
    %192 = vector.load %arg2[%c7_128, %c0_129] : memref<9x256xf32, #tpu.memory_space<vmem>>, vector<1x256xf32>
    %193 = vector.broadcast %192 : vector<1x256xf32> to vector<16x256xf32>
    %194 = arith.mulf %191, %193 : vector<16x256xf32>
    %195 = arith.truncf %194 : vector<16x256xf32> to vector<16x256xbf16>
    %c112_130 = arith.constant 112 : index
    %c0_131 = arith.constant 0 : index
    %196 = vector.load %arg16[%c112_130, %c0_131] : memref<144x256xbf16, #tpu.memory_space<vmem>>, vector<16x256xbf16>
    tpu.vector_store %arg16[%c112_130, %c0_131], %195 {strides = array<i32>} : memref<144x256xbf16, #tpu.memory_space<vmem>>, vector<16x256xbf16>,
    %c239_i32_132 = arith.constant 239 : i32
    %197 = tpu.dynamic_rotate %146 by %c239_i32_132 dim 1 : vector<16x256xf32>, i32 -> vector<16x256xf32>
    %c8_133 = arith.constant 8 : index
    %c0_134 = arith.constant 0 : index
    %198 = vector.load %arg2[%c8_133, %c0_134] : memref<9x256xf32, #tpu.memory_space<vmem>>, vector<1x256xf32>
    %199 = vector.broadcast %198 : vector<1x256xf32> to vector<16x256xf32>
    %200 = arith.mulf %197, %199 : vector<16x256xf32>
    %201 = arith.truncf %200 : vector<16x256xf32> to vector<16x256xbf16>
    %c128_135 = arith.constant 128 : index
    %c0_136 = arith.constant 0 : index
    %202 = vector.load %arg16[%c128_135, %c0_136] : memref<144x256xbf16, #tpu.memory_space<vmem>>, vector<16x256xbf16>
    tpu.vector_store %arg16[%c128_135, %c0_136], %201 {strides = array<i32>} : memref<144x256xbf16, #tpu.memory_space<vmem>>, vector<16x256xbf16>,
    %c0_137 = arith.constant 0 : index
    %c0_138 = arith.constant 0 : index
    %203 = vector.load %arg7[%c0_137, %c0_138] : memref<24x144xbf16, #tpu.memory_space<vmem>>, vector<24x144xbf16>
    %c0_139 = arith.constant 0 : index
    %c0_140 = arith.constant 0 : index
    %204 = vector.load %arg16[%c0_139, %c0_140] : memref<144x256xbf16, #tpu.memory_space<vmem>>, vector<144x256xbf16>
    %cst_141 = arith.constant dense<0.000000e+00> : vector<24x256xf32>
    %205 = tpu.matmul %203, %204, %cst_141 {dimension_numbers = #tpu.dot_dimension_numbers<[1], [0], [0], [1], [0, 0, 1, 1], [], []>} : vector<24x144xbf16>, vector<144x256xbf16>, vector<24x256xf32> -> vector<24x256xf32>
    %c0_142 = arith.constant 0 : index
    %c0_143 = arith.constant 0 : index
    %206 = vector.load %arg8[%c0_142, %c0_143] : memref<24x2xf32, #tpu.memory_space<vmem>>, vector<24x1xf32>
    %207 = vector.broadcast %206 : vector<24x1xf32> to vector<24x256xf32>
    %208 = arith.mulf %205, %207 : vector<24x256xf32>
    %c0_144 = arith.constant 0 : index
    %c1_145 = arith.constant 1 : index
    %209 = vector.load %arg8[%c0_144, %c1_145] : memref<24x2xf32, #tpu.memory_space<vmem>>, vector<24x1xf32>
    %210 = vector.broadcast %209 : vector<24x1xf32> to vector<24x256xf32>
    %211 = arith.addf %208, %210 : vector<24x256xf32>
    %212 = arith.negf %211 : vector<24x256xf32>
    %213 = math.exp %212 : vector<24x256xf32>
    %cst_146 = arith.constant 1.000000e+00 : f32
    %214 = vector.broadcast %cst_146 : f32 to vector<24x256xf32>
    %215 = arith.addf %214, %213 : vector<24x256xf32>
    %216 = arith.divf %214, %215 : vector<24x256xf32>
    %217 = arith.mulf %211, %216 : vector<24x256xf32>
    %c0_147 = arith.constant 0 : index
    %c0_148 = arith.constant 0 : index
    %c0_149 = arith.constant 0 : index
    %218 = vector.load %arg13[%c0_147, %c0_148, %c0_149] : memref<1x24x256xf32, #tpu.memory_space<vmem>>, vector<1x24x256xf32>
    %219 = vector.shape_cast %218 : vector<1x24x256xf32> to vector<24x256xf32>
    %220 = vector.shape_cast %217 : vector<24x256xf32> to vector<1x24x256xf32>
    tpu.vector_store %arg13[%c0_147, %c0_148, %c0_149], %220 {strides = array<i32>} : memref<1x24x256xf32, #tpu.memory_space<vmem>>, vector<1x24x256xf32>,
    return
  }
  func.func @transform_0(%arg0: i32) -> (i32, i32, i32) {
    %c0_i32 = arith.constant 0 : i32
    %c0_i32_0 = arith.constant 0 : i32
    %c0_i32_1 = arith.constant 0 : i32
    return %arg0, %c0_i32, %c0_i32_0 : i32, i32, i32
  }
  func.func @transform_1(%arg0: i32) -> (i32, i32) {
    %c0_i32 = arith.constant 0 : i32
    %c0_i32_0 = arith.constant 0 : i32
    %c0_i32_1 = arith.constant 0 : i32
    return %c0_i32, %c0_i32_0 : i32, i32
  }
  func.func @transform_2(%arg0: i32) -> (i32, i32) {
    %c0_i32 = arith.constant 0 : i32
    %c0_i32_0 = arith.constant 0 : i32
    %c0_i32_1 = arith.constant 0 : i32
    return %c0_i32, %c0_i32_0 : i32, i32
  }
  func.func @transform_3(%arg0: i32) -> (i32, i32) {
    %c0_i32 = arith.constant 0 : i32
    %c0_i32_0 = arith.constant 0 : i32
    %c0_i32_1 = arith.constant 0 : i32
    return %c0_i32, %c0_i32_0 : i32, i32
  }
  func.func @transform_4(%arg0: i32) -> (i32, i32) {
    %c0_i32 = arith.constant 0 : i32
    %c0_i32_0 = arith.constant 0 : i32
    %c0_i32_1 = arith.constant 0 : i32
    return %c0_i32, %c0_i32_0 : i32, i32
  }
  func.func @transform_5(%arg0: i32) -> (i32, i32) {
    %c0_i32 = arith.constant 0 : i32
    %c0_i32_0 = arith.constant 0 : i32
    %c0_i32_1 = arith.constant 0 : i32
    return %c0_i32, %c0_i32_0 : i32, i32
  }
  func.func @transform_6(%arg0: i32) -> (i32, i32) {
    %c0_i32 = arith.constant 0 : i32
    %c0_i32_0 = arith.constant 0 : i32
    %c0_i32_1 = arith.constant 0 : i32
    return %c0_i32, %c0_i32_0 : i32, i32
  }
  func.func @transform_7(%arg0: i32) -> (i32, i32) {
    %c0_i32 = arith.constant 0 : i32
    %c0_i32_0 = arith.constant 0 : i32
    %c0_i32_1 = arith.constant 0 : i32
    return %c0_i32, %c0_i32_0 : i32, i32
  }
  func.func @transform_8(%arg0: i32) -> (i32, i32, i32) {
    %c0_i32 = arith.constant 0 : i32
    %c0_i32_0 = arith.constant 0 : i32
    %c0_i32_1 = arith.constant 0 : i32
    return %arg0, %c0_i32, %c0_i32_0 : i32, i32, i32
  }
  func.func @transform_9(%arg0: i32) -> (i32, i32, i32) {
    %c0_i32 = arith.constant 0 : i32
    %c0_i32_0 = arith.constant 0 : i32
    %c0_i32_1 = arith.constant 0 : i32
    return %arg0, %c0_i32, %c0_i32_0 : i32, i32, i32
  }
  func.func @transform_10(%arg0: i32) -> (i32, i32, i32) {
    %c0_i32 = arith.constant 0 : i32
    %c0_i32_0 = arith.constant 0 : i32
    %c0_i32_1 = arith.constant 0 : i32
    return %arg0, %c0_i32, %c0_i32_0 : i32, i32, i32
  }
  func.func @transform_11(%arg0: i32) -> (i32, i32, i32) {
    %c0_i32 = arith.constant 0 : i32
    %c0_i32_0 = arith.constant 0 : i32
    %c0_i32_1 = arith.constant 0 : i32
    return %arg0, %c0_i32, %c0_i32_0 : i32, i32, i32
  }
  func.func @transform_12(%arg0: i32) -> (i32, i32, i32) {
    %c0_i32 = arith.constant 0 : i32
    %c0_i32_0 = arith.constant 0 : i32
    %c0_i32_1 = arith.constant 0 : i32
    return %arg0, %c0_i32, %c0_i32_0 : i32, i32, i32
  }
}

</mosaic_0001>

<bundles_post_ra>
// kernel: encoder_forward.1
= control target key start
LH: loop header
LB: loop body
LE: loop exit
PB: predicated region body
PF: predicated region fallthrough
CT: control target
= control target key end

     0   :  { %s2753_s21 = smov 0   ;;  %s3355_s0 = inlined_call_operand.vmem [shape: f32[2,4,256], index: 0, kind: input, shape index: {}]   ;;  %s3356_s1 = inlined_call_operand.vmem [shape: f32[9,256], index: 1, kind: input, shape index: {}]   ;;  %s3357_s2 = inlined_call_operand.vmem [shape: bf16[16,36], index: 2, kind: input, shape index: {}]   ;;  %s3358_s3 = inlined_call_operand.vmem [shape: f32[16,2], index: 3, kind: input, shape index: {}]   ;;  %s3359_s4 = inlined_call_operand.vmem [shape: bf16[16,144], index: 4, kind: input, shape index: {}]   ;;  %s3360_s5 = inlined_call_operand.vmem [shape: f32[16,2], index: 5, kind: input, shape index: {}]   ;;  %s3361_s6 = inlined_call_operand.vmem [shape: bf16[24,144], index: 6, kind: input, shape index: {}]   ;;  %s3362_s7 = inlined_call_operand.vmem [shape: f32[24,2], index: 7, kind: input, shape index: {}]   ;;  %s3363_s8 = inlined_call_operand.vmem [shape: f32[2,16,256], index: 8, kind: output, shape index: {0}]   ;;  %s3364_s9 = inlined_call_operand.vmem [shape: f32[2,16,256], index: 9, kind: output, shape index: {1}]   ;;  %s3365_s10 = inlined_call_operand.vmem [shape: f32[2,16,256], index: 10, kind: output, shape index: {2}]   ;;  %s3366_s11 = inlined_call_operand.vmem [shape: f32[2,16,256], index: 11, kind: output, shape index: {3}]   ;;  %s3367_s12 = inlined_call_operand.vmem [shape: f32[2,24,256], index: 12, kind: output, shape index: {4}]  }
   0x1 LB: > { %s2324_s22 = sadd.s32 4294967295, %s2676_s21   ;;  %p2328_p0 = scmp.ge.s32.totalorder %s2676_s21, 1  ;;  %s2676_s21 = sphi %s2753_s21, %s23_s21  }
   0x2   : > { %p371_p1 = scmp.lt.s32.totalorder %s2676_s21, 3 }
   0x4   : > { %p372_p2 = pnand %p2328_p0, %p371_p1 }
   0x5   : > { %p433_p3 = scmp.lt.s32.totalorder (!%p372_p2), %s2324_s22, 1  ;;  %s2678_s29 = smov (!%p372_p2), 127  }
   0x6   : > { %375 = sbr.rel (%p372_p2) target bundleno = 1255 (0x4e7), region = 52  ;;  %s2679_s30 = smov (!%p372_p2), 111  }
   0x7   : > { %s2680_s13 = smov (!%p372_p2), 112   ;;  %s2681_s14 = smov (!%p372_p2), 113  }
   0x8   : > { %s2682_s15 = smov (!%p372_p2), 16   ;;  %s2683_s16 = smov (!%p372_p2), 1  }
   0x9   : > { %s2684_s17 = smov (!%p372_p2), 17   ;;  %s2685_s18 = smov (!%p372_p2), 15  }
   0xb   : > { %v472_v0 = vlaneseq  ;;  %s3369_s22 = smov (!%p433_p3, %s2324_s22), 1  ;;  %v2347_v4 = vld [vmem:[%s3356_s1 + $0x4] ss:$8 sm:$0x3]  ;;  %v2686_v13 = vmov 0   ;;  %v2687_v16 = vmov 1  }
   0xc   : > { %s2479_s23 = sshll.u32 %s3369_s22, 3  ;;  %827 = vmatprep.mubr.bf16.mxu1 %v2686_v13  ;;  %2585 = vset.pattern.permute.xlu1 %v2686_v13  ;;  %v843_v14 = vld [vmem:[%s3358_s3 + $0x8] sm:$0xff]  ;;  %v842_v15 = vld [vmem:[%s3358_s3] sm:$0xff]  ;;  %v2355_v24 = vld [vmem:[%s3356_s1 + $0x10] ss:$8 sm:$0x3] }
   0xd   : > { %v480_v1 = vshrl.u32 %v472_v0, 7  ;;  %s437_s26 = scalar_lea.vmem %s3355_s0, %s2479_s23  ;;  %2584 = vset.pattern.permute.xlu0 %v2686_v13  ;;  %v2805_v17 = vand.u32 127, %v472_v0  ;;  %v2349_v18 = vld [vmem:[%s3356_s1 + $0x5] ss:$8 sm:$0x3]  ;;  %vm788_vm6 = vcmask 1041408  }
   0xe   : > { %v464_v5 = vld [vmem:[%s437_s26] sm:$0xff]  ;;  %vm784_vm9 = vcmask 293888   ;;  %s2893_s27 = sshll.u32 %s3369_s22, 5  ;;  %vm1391_vm10 = vcmask 130048  }
   0xf   : > { %v2764_v2 = vsub.s32 0, %v480_v1  ;;  %v2766_v3 = vsub.s32 1, %v480_v1  ;;  %621 = vrot.lane.b32.xlu1 %v464_v5, %s2678_s29  ;;  %716 = vrot.lane.b32.xlu0 %v464_v5, %s2679_s30  ;;  %v466_v6 = vcombine.high %v464_v5, %v464_v5  ;;  %vm625_vm0 = vcmp.lt.s32.totalorder %v2805_v17, 127  ;;  %v2353_v23 = vld [vmem:[%s3356_s1 + $0x7] ss:$8 sm:$0x3]  ;;  %s442_s20 = scalar_lea.vmem %s3363_s8, %s2893_s27  ;;  %s447_s25 = scalar_lea.vmem %s3364_s9, %s2893_s27 }
  0x10   : > { %vm688_vm1 = vcmp.lt.s32.totalorder %v2805_v17, 112  ;;  %vm720_vm2 = vcmp.lt.s32.totalorder %v2805_v17, 111  ;;  %v2351_v30 = vld [vmem:[%s3356_s1 + $0x6] ss:$8 sm:$0x3]  ;;  %vm657_vm3 = vcmp.lt.s32.totalorder %v2805_v17, 113  ;;  %s452_s19 = scalar_lea.vmem %s3365_s10, %s2893_s27 }
  0x11   : > { %v601_v7 = vrot.slane %v2347_v4, %v2764_v2  ;;  %v605_v8 = vrot.slane %v2347_v4, %v2766_v3  ;;  %v634_v21 = vrot.slane %v2349_v18, %v2764_v2  ;;  %v638_v22 = vrot.slane %v2349_v18, %v2766_v3  ;;  %v2341_v49 = vld [vmem:[%s3356_s1 + $0x1] ss:$8 sm:$0x3]  ;;  %v2345_v62 = vld [vmem:[%s3356_s1 + $0x3] ss:$8 sm:$0x3] }
  0x12   : > { %v697_v29 = vrot.slane %v2353_v23, %v2764_v2  ;;  %v701_v33 = vrot.slane %v2353_v23, %v2766_v3  ;;  %v729_v34 = vrot.slane %v2355_v24, %v2764_v2  ;;  %v733_v35 = vrot.slane %v2355_v24, %v2766_v3 }
  0x13   : > { %v606_v9 = vcombine.low %v601_v7, %v605_v8  ;;  %684 = vrot.lane.b32.xlu0 %v464_v5, %s2680_s13  ;;  %623 = vrot.lane.b32.xlu1 %v466_v6, %s2678_s29  ;;  %v666_v39 = vrot.slane %v2351_v30, %v2764_v2  ;;  %v670_v40 = vrot.slane %v2351_v30, %v2766_v3  ;;  %vm504_vm4 = vcmp.lt.s32.totalorder %v2805_v17, 16 }
  0x14   : > { %v513_v57 = vrot.slane %v2341_v49, %v2764_v2  ;;  %v517_v61 = vrot.slane %v2341_v49, %v2766_v3  ;;  %vm567_vm5 = vcmp.lt.s32.totalorder %v2805_v17, 1  ;;  %v576_v8 = vrot.slane %v2345_v62, %v2764_v2 }
  0x15   : > { %v608_v10 = vmul.f32 %v606_v9, %v464_v5  ;;  %v580_v9 = vrot.slane %v2345_v62, %v2766_v3  ;;  %vm474_vm7 = vcmp.lt.s32.totalorder %v2805_v17, 17  ;;  %vm536_vm8 = vcmp.lt.s32.totalorder %v2805_v17, 15 }
  0x17   : > { %v610_v11 = vcombine.high %v608_v10, %v608_v10  ;;  %686 = vrot.lane.b32.xlu1 %v466_v6, %s2680_s13  ;;  %718 = vrot.lane.b32.xlu0 %v466_v6, %s2679_s30 }
  0x19   : > { %v2488_v12 = vpack.c.bf16 %v610_v11, %v608_v10  ;;  %v477_v10 = vld [vmem:[%s3356_s1] ss:$8 sm:$0x3] }
  0x1a   : > { %v486_v24 = vrot.slane %v477_v10, %v2766_v3 }
  0x1b   : > { %620 = vst [vmem:[#allocation2 + $0x20] sm:$0x33] %v2488_v12  ;;  %655 = vrot.lane.b32.xlu1 %v466_v6, %s2681_s14  ;;  %653 = vrot.lane.b32.xlu0 %v464_v5, %s2681_s14 }
  0x1f   : > { %502 = vrot.lane.b32.xlu1 %v466_v6, %s2682_s15  ;;  %500 = vrot.lane.b32.xlu0 %v464_v5, %s2682_s15 }
  0x23   : > { %565 = vrot.lane.b32.xlu1 %v466_v6, %s2683_s16  ;;  %563 = vrot.lane.b32.xlu0 %v464_v5, %s2683_s16 }
  0x27   : > { %470 = vrot.lane.b32.xlu1 %v466_v6, %s2684_s17  ;;  %468 = vrot.lane.b32.xlu0 %v464_v5, %s2684_s17 }
  0x2b   : > { %534 = vrot.lane.b32.xlu1 %v466_v6, %s2685_s18  ;;  %532 = vrot.lane.b32.xlu0 %v464_v5, %s2685_s18 }
  0x2f   : > { %851 = vperm.xlu1 %2585, %v843_v14   ;;  %846 = vperm.xlu0 %2584, %v842_v15  }
  0x33   : > { %2586 = vset.pattern.permute.xlu1 %v2687_v16  ;;  %2587 = vset.pattern.permute.xlu0 %v2687_v16 }
  0x34   : > { %859 = vperm.xlu1 %2586, %v842_v15   ;;  %863 = vperm.xlu0 %2587, %v843_v14  }
  0x38   : > { %2589 = vset.pattern.permute.xlu1 %v2686_v13  ;;  %2588 = vset.pattern.permute.xlu0 %v2686_v13 }
  0x81   : > { %v622_v19 = vpop.permute.xlu1 %621  ;;  %v717_v20 = vpop.permute.xlu0 %716 }
  0x85   : > { %v685_v25 = vpop.permute.xlu0 %684  ;;  %v624_v26 = vpop.permute.xlu1 %623 }
  0x86   : > { %v626_v27 = vsel %vm625_vm0, %v622_v19, %v624_v26  ;;  %v627_v28 = vsel %vm625_vm0, %v624_v26, %v622_v19  ;;  %v482_v19 = vrot.slane %v477_v10, %v2764_v2 }
  0x87   : > { %v641_v31 = vmul.f32 %v634_v21, %v626_v27  ;;  %v642_v32 = vmul.f32 %v638_v22, %v627_v28 }
  0x89   : > { %v2489_v36 = vpack.c.bf16 %v642_v32, %v641_v31  ;;  %v687_v37 = vpop.permute.xlu1 %686  ;;  %v719_v38 = vpop.permute.xlu0 %718 }
  0x8a   : > { %v689_v41 = vsel %vm688_vm1, %v685_v25, %v687_v37  ;;  %v690_v42 = vsel %vm688_vm1, %v687_v37, %v685_v25  ;;  %v721_v43 = vsel %vm720_vm2, %v717_v20, %v719_v38  ;;  %v722_v44 = vsel %vm720_vm2, %v719_v38, %v717_v20  ;;  %v2343_v25 = vld [vmem:[%s3356_s1 + $0x2] ss:$8 sm:$0x3] }
  0x8b   : > { %v650_v45 = vrot.slane %v2489_v36, 6  ;;  %v704_v46 = vmul.f32 %v697_v29, %v689_v41  ;;  %v705_v47 = vmul.f32 %v701_v33, %v690_v42  ;;  %v736_v48 = vmul.f32 %v729_v34, %v721_v43 }
  0x8c   : > { %v737_v50 = vmul.f32 %v733_v35, %v722_v44  ;;  %v545_v35 = vrot.slane %v2343_v25, %v2764_v2 }
  0x8d   : > { %652 = vst [vmem:[#allocation2 + $0x20] sm:$0xcc] %v650_v45  ;;  %v2491_v51 = vpack.c.bf16 %v705_v47, %v704_v46  ;;  %v656_v52 = vpop.permute.xlu1 %655  ;;  %v654_v53 = vpop.permute.xlu0 %653 }
  0x8e   : > { %v2492_v54 = vpack.c.bf16 %v737_v50, %v736_v48  ;;  %v658_v55 = vsel %vm657_vm3, %v654_v53, %v656_v52  ;;  %v659_v56 = vsel %vm657_vm3, %v656_v52, %v654_v53 }
  0x8f   : > { %v713_v58 = vrot.slane %v2491_v51, 6  ;;  %v673_v59 = vmul.f32 %v666_v39, %v658_v55  ;;  %v674_v60 = vmul.f32 %v670_v40, %v659_v56  ;;  %v549_v39 = vrot.slane %v2343_v25, %v2766_v3  ;;  %v2605_v51 = vld [vmem:[%s3357_s2] sm:$0xff]  }
  0x90   : > { %746 = vst [vmem:[#allocation2 + $0x18] sm:$0x33] %v2492_v54 }
  0x91   : > { %715 = vst [vmem:[#allocation2 + $0x10] sm:$0xcc] %v713_v58  ;;  %v2490_v63 = vpack.c.bf16 %v674_v60, %v673_v59  ;;  %v503_v0 = vpop.permute.xlu1 %502  ;;  %v501_v1 = vpop.permute.xlu0 %500 }
  0x92   : > { %v505_v4 = vsel %vm504_vm4, %v501_v1, %v503_v0  ;;  %v506_v5 = vsel %vm504_vm4, %v503_v0, %v501_v1 }
  0x93   : > { %683 = vst [vmem:[#allocation2 + $0x10] sm:$0x33] %v2490_v63  ;;  %v520_v6 = vmul.f32 %v513_v57, %v506_v5  ;;  %v521_v7 = vmul.f32 %v517_v61, %v505_v4 }
  0x95   : > { %v2485_v11 = vpack.c.bf16 %v521_v7, %v520_v6  ;;  %v566_v12 = vpop.permute.xlu1 %565  ;;  %v564_v14 = vpop.permute.xlu0 %563 }
  0x96   : > { %v568_v15 = vsel %vm567_vm5, %v564_v14, %v566_v12  ;;  %v569_v18 = vsel %vm567_vm5, %v566_v12, %v564_v14 }
  0x97   : > { %v529_v20 = vrot.slane %v2485_v11, 6  ;;  %v583_v21 = vmul.f32 %v576_v8, %v569_v18  ;;  %v584_v22 = vmul.f32 %v580_v9, %v568_v15  ;;  %v753_v23 = vld [vmem:[#allocation2 + $0x18] sm:$0x33] }
  0x98   : > { %v2363_v26 = vcombine.high %v753_v23, %v753_v23  ;;  %v2362_v27 = vcombine.low %v753_v23, %v753_v23 }
  0x99   : > { %531 = vst [vmem:[#allocation2 + $0x8] sm:$0xcc] %v529_v20  ;;  %v2487_v28 = vpack.c.bf16 %v584_v22, %v583_v21  ;;  %v471_v29 = vpop.permute.xlu1 %470  ;;  %v469_v30 = vpop.permute.xlu0 %468  ;;  %v2381_v22 = vld [vmem:[%s3356_s1 + $0x4] ss:$8 sm:$0x3] }
  0x9a   : > { %2364 = vmatprep.subr.msk.bf16.mxu1 %vm788_vm6, %v2363_v26  ;;  %v475_v31 = vsel %vm474_vm7, %v469_v30, %v471_v29  ;;  %v476_v32 = vsel %vm474_vm7, %v471_v29, %v469_v30  ;;  %v790_v33 = vsel %vm788_vm6, %v2362_v27, 0  ;;  %v2599_v34 = vld [vmem:[#allocation2 + $0x24] ss:$-16 sps:$4 sm:$0xff]   ;;  %v2601_v43 = vld [vmem:[#allocation2 + $0x20] ss:$-16 sps:$4 sm:$0xff]   ;;  %v1079_v26 = vrot.slane %v2381_v22, %v2764_v2 }
  0x9b   : > { %v592_v36 = vrot.slane %v2487_v28, 6  ;;  %v489_v37 = vmul.f32 %v482_v19, %v476_v32  ;;  %v490_v38 = vmul.f32 %v486_v24, %v475_v31  ;;  %806 = vmatpush1.bf16.msra.mxu1 %v790_v33  ;;  %v1083_v29 = vrot.slane %v2381_v22, %v2766_v3 }
  0x9c   : > { %807 = vmatprep.subr.bf16.mxu1 %v2599_v34 }
  0x9d   : > { %594 = vst [vmem:[#allocation2] sm:$0xcc] %v592_v36  ;;  %v2484_v40 = vpack.c.bf16 %v490_v38, %v489_v37  ;;  %v535_v41 = vpop.permute.xlu1 %534  ;;  %v533_v42 = vpop.permute.xlu0 %532  ;;  %v2606_v38 = vld [vmem:[%s3359_s4 + $0x4] ss:$8 sps:$4 sm:$0xff]  }
  0x9e   : > { %v537_v44 = vsel %vm536_vm8, %v533_v42, %v535_v41  ;;  %v538_v45 = vsel %vm536_vm8, %v535_v41, %v533_v42 }
  0x9f   : > { %499 = vst [vmem:[#allocation2 + $0x8] sm:$0x33] %v2484_v40  ;;  %v552_v46 = vmul.f32 %v545_v35, %v538_v45  ;;  %v553_v47 = vmul.f32 %v549_v39, %v537_v44  ;;  %808 = vmatpush1.bf16.msra.mxu1 %v2601_v43  ;;  %v1438_v39 = vld [vmem:[%s3360_s5] sm:$0xff]  ;;  %v1439_v40 = vld [vmem:[%s3360_s5 + $0x8] sm:$0xff] }
  0xa1   : > { %v2486_v48 = vpack.c.bf16 %v553_v47, %v552_v46 }
  0xa3   : > { %562 = vst [vmem:[#allocation2] sm:$0x33] %v2486_v48 }
  0xaa   : > { %v2602_v49 = vld [vmem:[#allocation2 + $0xc] ss:$-8 sps:$4 sm:$0xff]   ;;  %v2604_v50 = vld [vmem:[#allocation2 + $0x8] ss:$-8 sps:$4 sm:$0xff]   ;;  %v852_v52 = vpop.permute.xlu1 %851  ;;  %v847_v53 = vpop.permute.xlu0 %846 }
  0xab   : > { %809 = vmatprep.subr.bf16.mxu1 %v2602_v49 }
  0xac   : > { %810 = vmatpush1.bf16.msra.mxu1 %v2604_v50 }
  0xaf   : > { %2365 = vmatmul.mubr.msk.bf16.vlgmr.msra.gmra.mxu1 %vm784_vm9, %v2605_v51  ;;  %v860_v55 = vpop.permute.xlu1 %859  ;;  %v864_v61 = vpop.permute.xlu0 %863 }
  0xb0   : > { %2416 = vmatprep.mubr.msk.bf16.mxu1 %vm1391_vm10, %v2606_v38 }
 0x16f   : > { %v829_v54 = vpop.f32.mrf.mxu1 }
 0x170   : > { %838 = vst [vmem:[%s442_s20] sm:$0xff] %v829_v54  ;;  %v854_v56 = vmul.f32 %v847_v53, %v829_v54  ;;  %v2390_v54 = vld [vmem:[%s3356_s1 + $0x7] ss:$8 sm:$0x3] }
 0x171   : > { %v831_v57 = vpop.f32.mrf.mxu1 }
 0x172   : > { %v866_v58 = vadd.f32 %v860_v55, %v854_v56  ;;  %839 = vst [vmem:[%s442_s20 + $0x8] sm:$0xff] %v831_v57  ;;  %v855_v59 = vmul.f32 %v847_v53, %v831_v57  ;;  %v1205_v57 = vrot.slane %v2390_v54, %v2764_v2 }
 0x173   : > { %v833_v60 = vpop.f32.mrf.mxu1 }
 0x174   : > { %870 = vst [vmem:[%s447_s25] sm:$0xff] %v866_v58  ;;  %v2366_v62 = vmul.f32 -1.442695, %v866_v58  ;;  %v867_v63 = vadd.f32 %v860_v55, %v855_v59  ;;  %840 = vst [vmem:[%s442_s20 + $0x10] sm:$0xff] %v833_v60  ;;  %v856_v0 = vmul.f32 %v852_v52, %v833_v60  ;;  %v2387_v59 = vld [vmem:[%s3356_s1 + $0x6] ss:$8 sm:$0x3] }
 0x175   : > { %v835_v1 = vpop.f32.mrf.mxu1 }
 0x176   : > { %2614 = vpow2.f32 %v2366_v62  ;;  %871 = vst [vmem:[%s447_s25 + $0x8] sm:$0xff] %v867_v63  ;;  %v2367_v4 = vmul.f32 -1.442695, %v867_v63  ;;  %841 = vst [vmem:[%s442_s20 + $0x18] sm:$0xff] %v835_v1  ;;  %v857_v5 = vmul.f32 %v852_v52, %v835_v1  ;;  %v868_v6 = vadd.f32 %v864_v61, %v856_v0  ;;  %s457_s20 = scalar_lea.vmem %s3366_s11, %s2893_s27 }
 0x177   : > { %v1163_v0 = vrot.slane %v2387_v59, %v2764_v2  ;;  %v1167_v1 = vrot.slane %v2387_v59, %v2766_v3 }
 0x178   : > { %2616 = vpow2.f32 %v2367_v4  ;;  %v869_v7 = vadd.f32 %v864_v61, %v857_v5  ;;  %872 = vst [vmem:[%s447_s25 + $0x10] sm:$0xff] %v868_v6  ;;  %v2368_v8 = vmul.f32 -1.442695, %v868_v6 }
 0x17a   : > { %873 = vst [vmem:[%s447_s25 + $0x18] sm:$0xff] %v869_v7  ;;  %2618 = vpow2.f32 %v2368_v8  ;;  %v2369_v9 = vmul.f32 -1.442695, %v869_v7 }
 0x17c   : > { %2620 = vpow2.f32 %v2369_v9 }
 0x183   : > { %v2615_v10 = vpop.eup %2614 }
 0x184   : > { %v886_v11 = vadd.f32 1.0, %v2615_v10  ;;  %v2384_v10 = vld [vmem:[%s3356_s1 + $0x5] ss:$8 sm:$0x3] }
 0x185   : > { %v2617_v12 = vpop.eup %2616 }
 0x186   : > { %2622 = vrcp.f32 %v886_v11  ;;  %v887_v14 = vadd.f32 1.0, %v2617_v12 }
 0x187   : > { %v2619_v15 = vpop.eup %2618 }
 0x188   : > { %2624 = vrcp.f32 %v887_v14  ;;  %v888_v18 = vadd.f32 1.0, %v2619_v15 }
 0x189   : > { %v2621_v19 = vpop.eup %2620 }
 0x18a   : > { %v889_v20 = vadd.f32 1.0, %v2621_v19  ;;  %2626 = vrcp.f32 %v888_v18 }
 0x18c   : > { %2628 = vrcp.f32 %v889_v20  ;;  %v1121_v20 = vrot.slane %v2384_v10, %v2764_v2 }
 0x193   : > { %v2623_v21 = vpop.eup %2622 }
 0x194   : > { %v898_v23 = vmul.f32 %v2623_v21, %v866_v58  ;;  %v1209_v58 = vrot.slane %v2390_v54, %v2766_v3  ;;  %v1125_v21 = vrot.slane %v2384_v10, %v2766_v3 }
 0x195   : > { %v2625_v24 = vpop.eup %2624 }
 0x196   : > { %902 = vst [vmem:[%s452_s19] sm:$0xff] %v898_v23  ;;  %v899_v25 = vmul.f32 %v2625_v24, %v867_v63  ;;  %1146 = vrot.lane.b32.xlu0 %v898_v23, %s2681_s14  ;;  %1188 = vrot.lane.b32.xlu1 %v898_v23, %s2680_s13  ;;  %v2916_v32 = vmul.f32 %v1079_v26, %v898_v23 }
 0x197   : > { %v2627_v27 = vpop.eup %2626 }
 0x198   : > { %903 = vst [vmem:[%s452_s19 + $0x8] sm:$0xff] %v899_v25  ;;  %v900_v28 = vmul.f32 %v2627_v27, %v868_v6  ;;  %v2920_v34 = vmul.f32 %v1083_v29, %v899_v25 }
 0x199   : > { %v2629_v30 = vpop.eup %2628 }
 0x19a   : > { %v901_v31 = vmul.f32 %v2629_v30, %v869_v7  ;;  %904 = vst [vmem:[%s452_s19 + $0x10] sm:$0xff] %v900_v28  ;;  %1104 = vrot.lane.b32.xlu0 %v898_v23, %s2678_s29  ;;  %1190 = vrot.lane.b32.xlu1 %v900_v28, %s2680_s13  ;;  %v2918_v33 = vmul.f32 %v1079_v26, %v900_v28 }
 0x19c   : > { %905 = vst [vmem:[%s452_s19 + $0x18] sm:$0xff] %v901_v31  ;;  %v2922_v35 = vmul.f32 %v1083_v29, %v901_v31  ;;  %v2537_v36 = vpack.c.bf16 %v2918_v33, %v2916_v32  ;;  %v918_v33 = vld [vmem:[%s3356_s1] ss:$8 sm:$0x3]  ;;  %s2565_s19 = smul.u32 48, %s3369_s22 }
 0x19e   : > { %1032 = vrot.lane.b32.xlu0 %v898_v23, %s2683_s16  ;;  %1148 = vrot.lane.b32.xlu1 %v900_v28, %s2681_s14  ;;  %v2538_v37 = vpack.c.bf16 %v2922_v35, %v2920_v34  ;;  %v2372_v34 = vld [vmem:[%s3356_s1 + $0x1] ss:$8 sm:$0x3]  ;;  %s462_s24 = scalar_lea.vmem %s3367_s12, %s2565_s19 }
 0x1a2   : > { %990 = vrot.lane.b32.xlu0 %v898_v23, %s2685_s18  ;;  %1106 = vrot.lane.b32.xlu1 %v900_v28, %s2678_s29 }
 0x1a6   : > { %948 = vrot.lane.b32.xlu0 %v898_v23, %s2682_s15  ;;  %1034 = vrot.lane.b32.xlu1 %v900_v28, %s2683_s16 }
 0x1aa   : > { %906 = vrot.lane.b32.xlu0 %v898_v23, %s2684_s17  ;;  %992 = vrot.lane.b32.xlu1 %v900_v28, %s2685_s18 }
 0x1ae   : > { %1192 = vrot.lane.b32.xlu0 %v899_v25, %s2680_s13  ;;  %950 = vrot.lane.b32.xlu1 %v900_v28, %s2682_s15 }
 0x1b2   : > { %1150 = vrot.lane.b32.xlu0 %v899_v25, %s2681_s14  ;;  %908 = vrot.lane.b32.xlu1 %v900_v28, %s2684_s17 }
 0x1b6   : > { %1108 = vrot.lane.b32.xlu0 %v899_v25, %s2678_s29  ;;  %1194 = vrot.lane.b32.xlu1 %v901_v31, %s2680_s13 }
 0x1ba   : > { %1230 = vrot.lane.b32.xlu0 %v898_v23, %s2679_s30  ;;  %1152 = vrot.lane.b32.xlu1 %v901_v31, %s2681_s14 }
 0x1be   : > { %1036 = vrot.lane.b32.xlu0 %v899_v25, %s2683_s16  ;;  %1110 = vrot.lane.b32.xlu1 %v901_v31, %s2678_s29 }
 0x1c2   : > { %994 = vrot.lane.b32.xlu0 %v899_v25, %s2685_s18  ;;  %1232 = vrot.lane.b32.xlu1 %v900_v28, %s2679_s30 }
 0x1c6   : > { %952 = vrot.lane.b32.xlu0 %v899_v25, %s2682_s15  ;;  %1038 = vrot.lane.b32.xlu1 %v901_v31, %s2683_s16 }
 0x1ca   : > { %910 = vrot.lane.b32.xlu0 %v899_v25, %s2684_s17  ;;  %996 = vrot.lane.b32.xlu1 %v901_v31, %s2685_s18 }
 0x1ce   : > { %1234 = vrot.lane.b32.xlu0 %v899_v25, %s2679_s30  ;;  %954 = vrot.lane.b32.xlu1 %v901_v31, %s2682_s15 }
 0x1d2   : > { %912 = vrot.lane.b32.xlu1 %v901_v31, %s2684_s17  ;;  %1442 = vperm.xlu0 %2588, %v1438_v39  }
 0x1d6   : > { %1236 = vrot.lane.b32.xlu1 %v901_v31, %s2679_s30  ;;  %2591 = vset.pattern.permute.xlu0 %v2687_v16 }
 0x1d7   : > { %1459 = vperm.xlu0 %2591, %v1439_v40  }
 0x1da   : > { %1447 = vperm.xlu1 %2589, %v1439_v40  }
 0x1db   : > { %2592 = vset.pattern.permute.xlu0 %v2686_v13 }
 0x1de   : > { %2590 = vset.pattern.permute.xlu1 %v2687_v16 }
 0x1df   : > { %1455 = vperm.xlu1 %2590, %v1438_v39  }
 0x1e3   : > { %2593 = vset.pattern.permute.xlu1 %v2686_v13 }
 0x208   : > { %v1189_v41 = vpop.permute.xlu1 %1188  ;;  %v1147_v42 = vpop.permute.xlu0 %1146 }
 0x20c   : > { %v1191_v43 = vpop.permute.xlu1 %1190  ;;  %v1105_v44 = vpop.permute.xlu0 %1104 }
 0x210   : > { %v1149_v45 = vpop.permute.xlu1 %1148  ;;  %v2970_v46 = vpop.permute.xlu0 %1032 }
 0x214   : > { %v1107_v47 = vpop.permute.xlu1 %1106  ;;  %v2972_v48 = vpop.permute.xlu0 %990 }
 0x218   : > { %v2974_v49 = vpop.permute.xlu1 %1034  ;;  %v2976_v50 = vpop.permute.xlu0 %948 }
 0x21c   : > { %v2978_v51 = vpop.permute.xlu1 %992  ;;  %v2980_v52 = vpop.permute.xlu0 %906 }
 0x220   : > { %v2982_v53 = vpop.permute.xlu1 %950  ;;  %v1193_v13 = vpop.permute.xlu0 %1192 }
 0x221   : > { %v1196_v60 = vsel %vm688_vm1, %v1189_v41, %v1193_v13  ;;  %v1198_v61 = vsel %vm688_vm1, %v1193_v13, %v1189_v41 }
 0x222   : > { %v1212_v6 = vmul.f32 %v1205_v57, %v1196_v60  ;;  %v1213_v7 = vmul.f32 %v1209_v58, %v1198_v61 }
 0x224   : > { %v2987_v55 = vpop.permute.xlu1 %908  ;;  %v1151_v56 = vpop.permute.xlu0 %1150 }
 0x225   : > { %v1154_v11 = vsel %vm657_vm3, %v1147_v42, %v1151_v56  ;;  %v1156_v12 = vsel %vm657_vm3, %v1151_v56, %v1147_v42 }
 0x226   : > { %v1170_v24 = vmul.f32 %v1163_v0, %v1154_v11  ;;  %v1171_v25 = vmul.f32 %v1167_v1, %v1156_v12  ;;  %v965_v12 = vrot.slane %v2372_v34, %v2764_v2 }
 0x228   : > { %v1195_v62 = vpop.permute.xlu1 %1194  ;;  %v1109_v63 = vpop.permute.xlu0 %1108 }
 0x229   : > { %v1197_v4 = vsel %vm688_vm1, %v1191_v43, %v1195_v62  ;;  %v1199_v5 = vsel %vm688_vm1, %v1195_v62, %v1191_v43  ;;  %v1112_v28 = vsel %vm625_vm0, %v1105_v44, %v1109_v63  ;;  %v1114_v29 = vsel %vm625_vm0, %v1109_v63, %v1105_v44  ;;  %v2378_v44 = vld [vmem:[%s3356_s1 + $0x3] ss:$8 sm:$0x3] }
 0x22a   : > { %v1214_v8 = vmul.f32 %v1205_v57, %v1197_v4  ;;  %v1215_v9 = vmul.f32 %v1209_v58, %v1199_v5  ;;  %v1128_v42 = vmul.f32 %v1121_v20, %v1112_v28  ;;  %v1129_v43 = vmul.f32 %v1125_v21, %v1114_v29 }
 0x22b   : > { %v1049_v59 = vrot.slane %v2378_v44, %v2764_v2  ;;  %v1053_v60 = vrot.slane %v2378_v44, %v2766_v3 }
 0x22c   : > { %v2543_v14 = vpack.c.bf16 %v1214_v8, %v1212_v6  ;;  %v1153_v15 = vpop.permute.xlu1 %1152  ;;  %v3011_v18 = vpop.permute.xlu0 %1230  ;;  %v2544_v19 = vpack.c.bf16 %v1215_v9, %v1213_v7 }
 0x22d   : > { %v1155_v22 = vsel %vm657_vm3, %v1149_v45, %v1153_v15  ;;  %v1157_v23 = vsel %vm657_vm3, %v1153_v15, %v1149_v45 }
 0x22e   : > { %v1172_v26 = vmul.f32 %v1163_v0, %v1155_v22  ;;  %v1173_v27 = vmul.f32 %v1167_v1, %v1157_v23  ;;  %1395 = vmatprep.subr.bf16.mxu1 %v2544_v19 }
 0x22f   : > { %1396 = vmatpush1.bf16.msra.mxu1 %v2543_v14  ;;  %v969_v14 = vrot.slane %v2372_v34, %v2766_v3 }
 0x230   : > { %v2541_v30 = vpack.c.bf16 %v1172_v26, %v1170_v24  ;;  %v1111_v31 = vpop.permute.xlu1 %1110  ;;  %v1037_v38 = vpop.permute.xlu0 %1036  ;;  %v2542_v39 = vpack.c.bf16 %v1173_v27, %v1171_v25  ;;  %v923_v26 = vrot.slane %v918_v33, %v2764_v2  ;;  %v927_v27 = vrot.slane %v918_v33, %v2766_v3 }
 0x231   : > { %v1113_v40 = vsel %vm625_vm0, %v1107_v47, %v1111_v31  ;;  %v1115_v41 = vsel %vm625_vm0, %v1111_v31, %v1107_v47  ;;  %v2375_v47 = vld [vmem:[%s3356_s1 + $0x2] ss:$8 sm:$0x3]  ;;  %v1040_v61 = vsel %vm567_vm5, %v2970_v46, %v1037_v38  ;;  %v1042_v62 = vsel %vm567_vm5, %v1037_v38, %v2970_v46 }
 0x232   : > { %v1130_v45 = vmul.f32 %v1121_v20, %v1113_v40  ;;  %v1131_v13 = vmul.f32 %v1125_v21, %v1115_v41  ;;  %1397 = vmatprep.subr.bf16.mxu1 %v2542_v39  ;;  %v1007_v1 = vrot.slane %v2375_v47, %v2764_v2  ;;  %v1011_v4 = vrot.slane %v2375_v47, %v2766_v3  ;;  %v2393_v39 = vld [vmem:[%s3356_s1 + $0x10] ss:$8 sm:$0x3] }
 0x233   : > { %1398 = vmatpush1.bf16.msra.mxu1 %v2541_v30  ;;  %v1056_v46 = vmul.f32 %v1049_v59, %v1042_v62  ;;  %v1057_v7 = vmul.f32 %v1053_v60, %v1040_v61  ;;  %v1251_v44 = vrot.slane %v2393_v39, %v2766_v3 }
 0x234   : > { %v2539_v54 = vpack.c.bf16 %v1130_v45, %v1128_v42  ;;  %v3030_v56 = vpop.permute.xlu1 %1232  ;;  %v995_v57 = vpop.permute.xlu0 %994  ;;  %v2540_v58 = vpack.c.bf16 %v1131_v13, %v1129_v43  ;;  %v1247_v13 = vrot.slane %v2393_v39, %v2764_v2 }
 0x235   : > { %v998_v35 = vsel %vm536_vm8, %v2972_v48, %v995_v57 }
 0x236   : > { %1399 = vmatprep.subr.bf16.mxu1 %v2540_v58  ;;  %v1015_v20 = vmul.f32 %v1011_v4, %v998_v35 }
 0x237   : > { %1400 = vmatpush1.bf16.msra.mxu1 %v2539_v54 }
 0x238   : > { %v1039_v63 = vpop.permute.xlu1 %1038  ;;  %1401 = vmatprep.subr.bf16.mxu1 %v2538_v37  ;;  %v953_v0 = vpop.permute.xlu0 %952  ;;  %v1000_v37 = vsel %vm536_vm8, %v995_v57, %v2972_v48 }
 0x239   : > { %v1041_v5 = vsel %vm567_vm5, %v2974_v49, %v1039_v63  ;;  %v1043_v6 = vsel %vm567_vm5, %v1039_v63, %v2974_v49  ;;  %v1014_v48 = vmul.f32 %v1007_v1, %v1000_v37  ;;  %v956_v22 = vsel %vm504_vm4, %v2976_v50, %v953_v0 }
 0x23a   : > { %v1058_v8 = vmul.f32 %v1049_v59, %v1043_v6  ;;  %v1059_v9 = vmul.f32 %v1053_v60, %v1041_v5  ;;  %v958_v23 = vsel %vm504_vm4, %v953_v0, %v2976_v50  ;;  %v973_v31 = vmul.f32 %v969_v14, %v956_v22 }
 0x23b   : > { %1402 = vmatpush1.bf16.msra.mxu1 %v2537_v36  ;;  %v972_v30 = vmul.f32 %v965_v12, %v958_v23 }
 0x23c   : > { %v2535_v49 = vpack.c.bf16 %v1058_v8, %v1056_v46  ;;  %v997_v10 = vpop.permute.xlu1 %996  ;;  %v2536_v11 = vpack.c.bf16 %v1059_v9, %v1057_v7  ;;  %v911_v36 = vpop.permute.xlu0 %910  ;;  %v2608_v8 = vld [vmem:[%s3359_s4] ss:$8 sps:$4 sm:$0xff]  }
 0x23d   : > { %v999_v15 = vsel %vm536_vm8, %v2978_v51, %v997_v10  ;;  %v1001_v19 = vsel %vm536_vm8, %v997_v10, %v2978_v51  ;;  %v914_v40 = vsel %vm474_vm7, %v2980_v52, %v911_v36  ;;  %v916_v41 = vsel %vm474_vm7, %v911_v36, %v2980_v52 }
 0x23e   : > { %v1016_v21 = vmul.f32 %v1007_v1, %v1001_v19  ;;  %v1017_v32 = vmul.f32 %v1011_v4, %v999_v15  ;;  %1403 = vmatprep.subr.bf16.mxu1 %v2536_v11  ;;  %v930_v58 = vmul.f32 %v923_v26, %v916_v41  ;;  %v931_v59 = vmul.f32 %v927_v27, %v914_v40 }
 0x23f   : > { %1404 = vmatpush1.bf16.msra.mxu1 %v2535_v49 }
 0x240   : > { %v2533_v51 = vpack.c.bf16 %v1016_v21, %v1014_v48  ;;  %v955_v24 = vpop.permute.xlu1 %954  ;;  %v2534_v25 = vpack.c.bf16 %v1017_v32, %v1015_v20 }
 0x241   : > { %v957_v28 = vsel %vm504_vm4, %v2982_v53, %v955_v24  ;;  %v959_v29 = vsel %vm504_vm4, %v955_v24, %v2982_v53  ;;  %v1235_v53 = vpop.permute.xlu0 %1234 }
 0x242   : > { %v974_v38 = vmul.f32 %v965_v12, %v959_v29  ;;  %v975_v50 = vmul.f32 %v969_v14, %v957_v28  ;;  %1405 = vmatprep.subr.bf16.mxu1 %v2534_v25  ;;  %v1238_v47 = vsel %vm720_vm2, %v3011_v18, %v1235_v53  ;;  %v1240_v61 = vsel %vm720_vm2, %v1235_v53, %v3011_v18 }
 0x243   : > { %1406 = vmatpush1.bf16.msra.mxu1 %v2533_v51  ;;  %v1254_v4 = vmul.f32 %v1247_v13, %v1238_v47  ;;  %v1255_v5 = vmul.f32 %v1251_v44, %v1240_v61  ;;  %v2048_v47 = vld [vmem:[%s3362_s7 + $0x8] sm:$0xff]  ;;  %v2047_v61 = vld [vmem:[%s3362_s7] sm:$0xff] }
 0x244   : > { %v2531_v42 = vpack.c.bf16 %v974_v38, %v972_v30  ;;  %v913_v43 = vpop.permute.xlu1 %912  ;;  %v2532_v45 = vpack.c.bf16 %v975_v50, %v973_v31  ;;  %v2432_v38 = vld [vmem:[%s3356_s1 + $0x4] ss:$8 sm:$0x3] }
 0x245   : > { %v915_v54 = vsel %vm474_vm7, %v2987_v55, %v913_v43  ;;  %v917_v57 = vsel %vm474_vm7, %v913_v43, %v2987_v55  ;;  %v1671_v41 = vrot.slane %v2432_v38, %v2764_v2  ;;  %v1675_v43 = vrot.slane %v2432_v38, %v2766_v3 }
 0x246   : > { %v932_v52 = vmul.f32 %v923_v26, %v917_v57  ;;  %v933_v60 = vmul.f32 %v927_v27, %v915_v54  ;;  %1407 = vmatprep.subr.bf16.mxu1 %v2532_v45 }
 0x247   : > { %1408 = vmatpush1.bf16.msra.mxu1 %v2531_v42 }
 0x248   : > { %v2529_v62 = vpack.c.bf16 %v932_v52, %v930_v58  ;;  %v1237_v63 = vpop.permute.xlu1 %1236  ;;  %v2530_v0 = vpack.c.bf16 %v933_v60, %v931_v59  ;;  %v2611_v60 = vld [vmem:[%s3361_s6 + $0x4] ss:$8 sps:$4 sm:$0xff]  }
 0x249   : > { %v1239_v55 = vsel %vm720_vm2, %v3030_v56, %v1237_v63  ;;  %v1241_v1 = vsel %vm720_vm2, %v1237_v63, %v3030_v56  ;;  %2469 = vmatprep.mubr.msk.bf16.mxu0 %vm1391_vm10, %v2611_v60 }
 0x24a   : > { %v1256_v6 = vmul.f32 %v1247_v13, %v1239_v55  ;;  %v1257_v46 = vmul.f32 %v1251_v44, %v1241_v1  ;;  %1409 = vmatprep.subr.bf16.mxu1 %v2530_v0 }
 0x24b   : > { %1410 = vmatpush1.bf16.msra.mxu1 %v2529_v62  ;;  %v2049_v62 = vld [vmem:[%s3362_s7 + $0x10] sm:$0xff] }
 0x24c   : > { %v2545_v7 = vpack.c.bf16 %v1256_v6, %v1254_v4  ;;  %v2546_v18 = vpack.c.bf16 %v1257_v46, %v1255_v5 }
 0x24d   : > { %v1443_v34 = vpop.permute.xlu0 %1442 }
 0x24e   : > { %1425 = vmatprep.subr.bf16.mxu1 %v2546_v18 }
 0x24f   : > { %1426 = vmatpush2.bf16.msra.mxu1 %v2545_v7 }
 0x252   : > { %1428 = vmatmul.mubr.bf16.vlgmr.msra.gmra.mxu1 %v2608_v8  ;;  %v1460_v14 = vpop.permute.xlu0 %1459 }
 0x255   : > { %v1448_v9 = vpop.permute.xlu1 %1447 }
 0x25a   : > { %v1456_v37 = vpop.permute.xlu1 %1455 }
 0x312   : > { %v1429_v35 = vpop.f32.mrf.mxu1 }
 0x313   : > { %v1450_v56 = vmul.f32 %v1443_v34, %v1429_v35  ;;  %v2441_v35 = vld [vmem:[%s3356_s1 + $0x7] ss:$8 sm:$0x3] }
 0x314   : > { %v1431_v49 = vpop.f32.mrf.mxu1 }
 0x315   : > { %v1462_v10 = vadd.f32 %v1456_v37, %v1450_v56  ;;  %v1451_v11 = vmul.f32 %v1443_v34, %v1431_v49  ;;  %v1797_v49 = vrot.slane %v2441_v35, %v2764_v2 }
 0x316   : > { %v1433_v12 = vpop.f32.mrf.mxu1 }
 0x317   : > { %v2417_v15 = vmul.f32 -1.442695, %v1462_v10  ;;  %v1463_v19 = vadd.f32 %v1456_v37, %v1451_v11  ;;  %v1452_v48 = vmul.f32 %v1448_v9, %v1433_v12  ;;  %v1801_v11 = vrot.slane %v2441_v35, %v2766_v3 }
 0x318   : > { %v1435_v20 = vpop.f32.mrf.mxu1 }
 0x319   : > { %2630 = vpow2.f32 %v2417_v15  ;;  %v2418_v21 = vmul.f32 -1.442695, %v1463_v19  ;;  %v1453_v32 = vmul.f32 %v1448_v9, %v1435_v20  ;;  %v1464_v33 = vadd.f32 %v1460_v14, %v1452_v48 }
 0x31b   : > { %2632 = vpow2.f32 %v2418_v21  ;;  %v1465_v36 = vadd.f32 %v1460_v14, %v1453_v32  ;;  %v2419_v22 = vmul.f32 -1.442695, %v1464_v33 }
 0x31d   : > { %2634 = vpow2.f32 %v2419_v22  ;;  %v2420_v23 = vmul.f32 -1.442695, %v1465_v36  ;;  %v2435_v22 = vld [vmem:[%s3356_s1 + $0x5] ss:$8 sm:$0x3] }
 0x31f   : > { %2636 = vpow2.f32 %v2420_v23 }
 0x326   : > { %v2631_v51 = vpop.eup %2630 }
 0x327   : > { %v1478_v24 = vadd.f32 1.0, %v2631_v51 }
 0x328   : > { %v2633_v25 = vpop.eup %2632 }
 0x329   : > { %2638 = vrcp.f32 %v1478_v24  ;;  %v1479_v26 = vadd.f32 1.0, %v2633_v25 }
 0x32a   : > { %v2635_v27 = vpop.eup %2634 }
 0x32b   : > { %2640 = vrcp.f32 %v1479_v26  ;;  %v1480_v28 = vadd.f32 1.0, %v2635_v27 }
 0x32c   : > { %v2637_v29 = vpop.eup %2636 }
 0x32d   : > { %v1481_v30 = vadd.f32 1.0, %v2637_v29  ;;  %2642 = vrcp.f32 %v1480_v28 }
 0x32f   : > { %2644 = vrcp.f32 %v1481_v30  ;;  %v1713_v30 = vrot.slane %v2435_v22, %v2764_v2 }
 0x336   : > { %v2639_v31 = vpop.eup %2638 }
 0x337   : > { %v1490_v50 = vmul.f32 %v2639_v31, %v1462_v10  ;;  %v2438_v10 = vld [vmem:[%s3356_s1 + $0x6] ss:$8 sm:$0x3]  ;;  %v1717_v31 = vrot.slane %v2435_v22, %v2766_v3 }
 0x338   : > { %v2641_v39 = vpop.eup %2640  ;;  %v1755_v48 = vrot.slane %v2438_v10, %v2764_v2  ;;  %v1759_v20 = vrot.slane %v2438_v10, %v2766_v3 }
 0x339   : > { %1494 = vst [vmem:[%s457_s20] sm:$0xff] %v1490_v50  ;;  %v1491_v40 = vmul.f32 %v2641_v39, %v1463_v19  ;;  %1738 = vrot.lane.b32.xlu0 %v1490_v50, %s2681_s14  ;;  %1780 = vrot.lane.b32.xlu1 %v1490_v50, %s2680_s13  ;;  %v3136_v44 = vmul.f32 %v1671_v41, %v1490_v50 }
 0x33a   : > { %v2643_v42 = vpop.eup %2642 }
 0x33b   : > { %1495 = vst [vmem:[%s457_s20 + $0x8] sm:$0xff] %v1491_v40  ;;  %v1492_v53 = vmul.f32 %v2643_v42, %v1464_v33  ;;  %v3140_v57 = vmul.f32 %v1675_v43, %v1491_v40 }
 0x33c   : > { %v2645_v45 = vpop.eup %2644 }
 0x33d   : > { %v1493_v13 = vmul.f32 %v2645_v45, %v1465_v36  ;;  %1496 = vst [vmem:[%s457_s20 + $0x10] sm:$0xff] %v1492_v53  ;;  %1696 = vrot.lane.b32.xlu0 %v1490_v50, %s2678_s29  ;;  %1782 = vrot.lane.b32.xlu1 %v1492_v53, %s2680_s13  ;;  %v3138_v54 = vmul.f32 %v1671_v41, %v1492_v53 }
 0x33f   : > { %1497 = vst [vmem:[%s457_s20 + $0x18] sm:$0xff] %v1493_v13  ;;  %v3142_v58 = vmul.f32 %v1675_v43, %v1493_v13  ;;  %v2555_v59 = vpack.c.bf16 %v3138_v54, %v3136_v44  ;;  %v1510_v54 = vld [vmem:[%s3356_s1] ss:$8 sm:$0x3] }
 0x341   : > { %1624 = vrot.lane.b32.xlu0 %v1490_v50, %s2683_s16  ;;  %1740 = vrot.lane.b32.xlu1 %v1492_v53, %s2681_s14  ;;  %v2556_v52 = vpack.c.bf16 %v3142_v58, %v3140_v57  ;;  %v2423_v57 = vld [vmem:[%s3356_s1 + $0x1] ss:$8 sm:$0x3] }
 0x345   : > { %1582 = vrot.lane.b32.xlu0 %v1490_v50, %s2685_s18  ;;  %1698 = vrot.lane.b32.xlu1 %v1492_v53, %s2678_s29 }
 0x349   : > { %1540 = vrot.lane.b32.xlu0 %v1490_v50, %s2682_s15  ;;  %1626 = vrot.lane.b32.xlu1 %v1492_v53, %s2683_s16 }
 0x34d   : > { %1498 = vrot.lane.b32.xlu0 %v1490_v50, %s2684_s17  ;;  %1584 = vrot.lane.b32.xlu1 %v1492_v53, %s2685_s18 }
 0x351   : > { %1784 = vrot.lane.b32.xlu0 %v1491_v40, %s2680_s13  ;;  %1542 = vrot.lane.b32.xlu1 %v1492_v53, %s2682_s15 }
 0x355   : > { %1742 = vrot.lane.b32.xlu0 %v1491_v40, %s2681_s14  ;;  %1500 = vrot.lane.b32.xlu1 %v1492_v53, %s2684_s17 }
 0x359   : > { %1700 = vrot.lane.b32.xlu0 %v1491_v40, %s2678_s29  ;;  %1786 = vrot.lane.b32.xlu1 %v1493_v13, %s2680_s13 }
 0x35d   : > { %1822 = vrot.lane.b32.xlu0 %v1490_v50, %s2679_s30  ;;  %1744 = vrot.lane.b32.xlu1 %v1493_v13, %s2681_s14 }
 0x361   : > { %1628 = vrot.lane.b32.xlu0 %v1491_v40, %s2683_s16  ;;  %1702 = vrot.lane.b32.xlu1 %v1493_v13, %s2678_s29 }
 0x365   : > { %1586 = vrot.lane.b32.xlu0 %v1491_v40, %s2685_s18  ;;  %1824 = vrot.lane.b32.xlu1 %v1492_v53, %s2679_s30 }
 0x369   : > { %1544 = vrot.lane.b32.xlu0 %v1491_v40, %s2682_s15  ;;  %1630 = vrot.lane.b32.xlu1 %v1493_v13, %s2683_s16 }
 0x36d   : > { %1502 = vrot.lane.b32.xlu0 %v1491_v40, %s2684_s17  ;;  %1588 = vrot.lane.b32.xlu1 %v1493_v13, %s2685_s18 }
 0x371   : > { %1826 = vrot.lane.b32.xlu0 %v1491_v40, %s2679_s30  ;;  %1546 = vrot.lane.b32.xlu1 %v1493_v13, %s2682_s15 }
 0x375   : > { %1504 = vrot.lane.b32.xlu1 %v1493_v13, %s2684_s17  ;;  %2052 = vperm.xlu0 %2592, %v2047_v61  }
 0x379   : > { %1828 = vrot.lane.b32.xlu1 %v1493_v13, %s2679_s30  ;;  %2594 = vset.pattern.permute.xlu0 %v2687_v16 }
 0x37a   : > { %2072 = vperm.xlu0 %2594, %v2047_v61  }
 0x37d   : > { %2057 = vperm.xlu1 %2593, %v2048_v47  }
 0x381   : > { %2062 = vperm.xlu1 %2593, %v2049_v62  }
 0x385   : > { %2595 = vset.pattern.permute.xlu1 %v2687_v16 }
 0x386   : > { %2076 = vperm.xlu1 %2595, %v2048_v47  }
 0x38a   : > { %2080 = vperm.xlu1 %2595, %v2049_v62  }
 0x3ab   : > { %v1781_v63 = vpop.permute.xlu1 %1780  ;;  %v1739_v0 = vpop.permute.xlu0 %1738 }
 0x3af   : > { %v1783_v55 = vpop.permute.xlu1 %1782  ;;  %v1697_v1 = vpop.permute.xlu0 %1696 }
 0x3b3   : > { %v1741_v4 = vpop.permute.xlu1 %1740  ;;  %v3191_v5 = vpop.permute.xlu0 %1624 }
 0x3b7   : > { %v1699_v6 = vpop.permute.xlu1 %1698  ;;  %v3193_v46 = vpop.permute.xlu0 %1582 }
 0x3bb   : > { %v3195_v7 = vpop.permute.xlu1 %1626  ;;  %v3197_v18 = vpop.permute.xlu0 %1540 }
 0x3bf   : > { %v3199_v8 = vpop.permute.xlu1 %1584  ;;  %v3201_v9 = vpop.permute.xlu0 %1498 }
 0x3c3   : > { %v3203_v16 = vpop.permute.xlu1 %1542  ;;  %v1785_v34 = vpop.permute.xlu0 %1784 }
 0x3c4   : > { %v1788_v12 = vsel %vm688_vm1, %v1781_v63, %v1785_v34  ;;  %v1790_v14 = vsel %vm688_vm1, %v1785_v34, %v1781_v63 }
 0x3c5   : > { %v1804_v33 = vmul.f32 %v1797_v49, %v1788_v12  ;;  %v1805_v23 = vmul.f32 %v1801_v11, %v1790_v14 }
 0x3c7   : > { %v3208_v37 = vpop.permute.xlu1 %1500  ;;  %v1743_v56 = vpop.permute.xlu0 %1742 }
 0x3c8   : > { %v1746_v24 = vsel %vm657_vm3, %v1739_v0, %v1743_v56  ;;  %v1748_v25 = vsel %vm657_vm3, %v1743_v56, %v1739_v0 }
 0x3c9   : > { %v1762_v39 = vmul.f32 %v1755_v48, %v1746_v24  ;;  %v1763_v40 = vmul.f32 %v1759_v20, %v1748_v25  ;;  %v1557_v24 = vrot.slane %v2423_v57, %v2764_v2  ;;  %v1561_v25 = vrot.slane %v2423_v57, %v2766_v3 }
 0x3cb   : > { %v1787_v15 = vpop.permute.xlu1 %1786  ;;  %v1701_v19 = vpop.permute.xlu0 %1700 }
 0x3cc   : > { %v1789_v21 = vsel %vm688_vm1, %v1783_v55, %v1787_v15  ;;  %v1791_v32 = vsel %vm688_vm1, %v1787_v15, %v1783_v55  ;;  %v1704_v53 = vsel %vm625_vm0, %v1697_v1, %v1701_v19  ;;  %v1706_v43 = vsel %vm625_vm0, %v1701_v19, %v1697_v1  ;;  %v2429_v1 = vld [vmem:[%s3356_s1 + $0x3] ss:$8 sm:$0x3] }
 0x3cd   : > { %v1806_v36 = vmul.f32 %v1797_v49, %v1789_v21  ;;  %v1807_v51 = vmul.f32 %v1801_v11, %v1791_v32  ;;  %v1720_v63 = vmul.f32 %v1713_v30, %v1704_v53  ;;  %v1721_v0 = vmul.f32 %v1717_v31, %v1706_v43 }
 0x3ce   : > { %v1641_v10 = vrot.slane %v2429_v1, %v2764_v2  ;;  %v1645_v11 = vrot.slane %v2429_v1, %v2766_v3 }
 0x3cf   : > { %v1745_v26 = vpop.permute.xlu1 %1744  ;;  %v3232_v27 = vpop.permute.xlu0 %1822  ;;  %v2562_v28 = vpack.c.bf16 %v1807_v51, %v1805_v23  ;;  %v2561_v29 = vpack.c.bf16 %v1806_v36, %v1804_v33 }
 0x3d0   : > { %v1747_v38 = vsel %vm657_vm3, %v1741_v4, %v1745_v26  ;;  %v1749_v50 = vsel %vm657_vm3, %v1745_v26, %v1741_v4 }
 0x3d1   : > { %v1764_v41 = vmul.f32 %v1755_v48, %v1747_v38  ;;  %v1765_v42 = vmul.f32 %v1759_v20, %v1749_v50  ;;  %1996 = vmatprep.subr.bf16.mxu0 %v2562_v28 }
 0x3d2   : > { %1997 = vmatpush1.bf16.msra.mxu0 %v2561_v29 }
 0x3d3   : > { %v1703_v45 = vpop.permute.xlu1 %1702  ;;  %v1629_v13 = vpop.permute.xlu0 %1628  ;;  %v2560_v60 = vpack.c.bf16 %v1765_v42, %v1763_v40  ;;  %v2559_v47 = vpack.c.bf16 %v1764_v41, %v1762_v39  ;;  %v1515_v40 = vrot.slane %v1510_v54, %v2764_v2  ;;  %v1519_v41 = vrot.slane %v1510_v54, %v2766_v3 }
 0x3d4   : > { %v1705_v61 = vsel %vm625_vm0, %v1699_v6, %v1703_v45  ;;  %v1707_v62 = vsel %vm625_vm0, %v1703_v45, %v1699_v6  ;;  %v2426_v6 = vld [vmem:[%s3356_s1 + $0x2] ss:$8 sm:$0x3]  ;;  %v1632_v12 = vsel %vm567_vm5, %v3191_v5, %v1629_v13  ;;  %v1634_v14 = vsel %vm567_vm5, %v1629_v13, %v3191_v5 }
 0x3d5   : > { %v1722_v55 = vmul.f32 %v1713_v30, %v1705_v61  ;;  %v1723_v4 = vmul.f32 %v1717_v31, %v1707_v62  ;;  %1998 = vmatprep.subr.bf16.mxu0 %v2560_v60  ;;  %v1599_v48 = vrot.slane %v2426_v6, %v2764_v2  ;;  %v1603_v20 = vrot.slane %v2426_v6, %v2766_v3  ;;  %v2444_v60 = vld [vmem:[%s3356_s1 + $0x10] ss:$8 sm:$0x3] }
 0x3d6   : > { %1999 = vmatpush1.bf16.msra.mxu0 %v2559_v47  ;;  %v1648_v5 = vmul.f32 %v1641_v10, %v1634_v14  ;;  %v1649_v33 = vmul.f32 %v1645_v11, %v1632_v12 }
 0x3d7   : > { %v3251_v34 = vpop.permute.xlu1 %1824  ;;  %v1587_v35 = vpop.permute.xlu0 %1586  ;;  %v2558_v56 = vpack.c.bf16 %v1723_v4, %v1721_v0  ;;  %v2557_v49 = vpack.c.bf16 %v1722_v55, %v1720_v63  ;;  %v1839_v55 = vrot.slane %v2444_v60, %v2764_v2  ;;  %v1843_v4 = vrot.slane %v2444_v60, %v2766_v3 }
 0x3d8   : > { %v1590_v58 = vsel %vm536_vm8, %v3193_v46, %v1587_v35 }
 0x3d9   : > { %2000 = vmatprep.subr.bf16.mxu0 %v2558_v56  ;;  %v1607_v29 = vmul.f32 %v1603_v20, %v1590_v58 }
 0x3da   : > { %2001 = vmatpush1.bf16.msra.mxu0 %v2557_v49 }
 0x3db   : > { %v1631_v15 = vpop.permute.xlu1 %1630  ;;  %2002 = vmatprep.subr.bf16.mxu0 %v2556_v52  ;;  %v1545_v19 = vpop.permute.xlu0 %1544  ;;  %v1592_v52 = vsel %vm536_vm8, %v1587_v35, %v3193_v46 }
 0x3dc   : > { %v1633_v21 = vsel %vm567_vm5, %v3195_v7, %v1631_v15  ;;  %v1635_v32 = vsel %vm567_vm5, %v1631_v15, %v3195_v7  ;;  %v1606_v46 = vmul.f32 %v1599_v48, %v1592_v52  ;;  %v1548_v31 = vsel %vm504_vm4, %v3197_v18, %v1545_v19 }
 0x3dd   : > { %v1650_v36 = vmul.f32 %v1641_v10, %v1635_v32  ;;  %v1651_v22 = vmul.f32 %v1645_v11, %v1633_v21  ;;  %v1550_v38 = vsel %vm504_vm4, %v1545_v19, %v3197_v18  ;;  %v1565_v45 = vmul.f32 %v1561_v25, %v1548_v31  ;;  %v1866_v32 = vld [vmem:[%s3361_s6 + $0x10] sm:$0xff] }
 0x3de   : > { %2003 = vmatpush1.bf16.msra.mxu0 %v2555_v59  ;;  %v1564_v43 = vmul.f32 %v1557_v24, %v1550_v38  ;;  %v2450_v17 = vcombine.high %v1866_v32, %v1866_v32 }
 0x3df   : > { %v1589_v7 = vpop.permute.xlu1 %1588  ;;  %v2554_v23 = vpack.c.bf16 %v1651_v22, %v1649_v33  ;;  %v2553_v51 = vpack.c.bf16 %v1650_v36, %v1648_v5  ;;  %v1503_v59 = vpop.permute.xlu0 %1502  ;;  %v2609_v5 = vld [vmem:[%s3361_s6] ss:$8 sps:$4 sm:$0xff]  }
 0x3e0   : > { %v1591_v26 = vsel %vm536_vm8, %v3199_v8, %v1589_v7  ;;  %v1593_v28 = vsel %vm536_vm8, %v1589_v7, %v3199_v8  ;;  %v1506_v47 = vsel %vm474_vm7, %v3201_v9, %v1503_v59  ;;  %v1508_v61 = vsel %vm474_vm7, %v1503_v59, %v3201_v9 }
 0x3e1   : > { %v1608_v30 = vmul.f32 %v1599_v48, %v1593_v28  ;;  %v1609_v44 = vmul.f32 %v1603_v20, %v1591_v26  ;;  %2004 = vmatprep.subr.bf16.mxu0 %v2554_v23  ;;  %v1522_v56 = vmul.f32 %v1515_v40, %v1508_v61  ;;  %v1523_v49 = vmul.f32 %v1519_v41, %v1506_v47 }
 0x3e2   : > { %2005 = vmatpush1.bf16.msra.mxu0 %v2553_v51 }
 0x3e3   : > { %v1547_v8 = vpop.permute.xlu1 %1546  ;;  %v2552_v50 = vpack.c.bf16 %v1609_v44, %v1607_v29  ;;  %v2551_v39 = vpack.c.bf16 %v1608_v30, %v1606_v46  ;;  %v1827_v62 = vpop.permute.xlu0 %1826 }
 0x3e4   : > { %v1549_v42 = vsel %vm504_vm4, %v3203_v16, %v1547_v8  ;;  %v1551_v53 = vsel %vm504_vm4, %v1547_v8, %v3203_v16  ;;  %v1830_v11 = vsel %vm720_vm2, %v3232_v27, %v1827_v62  ;;  %v1832_v2 = vsel %vm720_vm2, %v1827_v62, %v3232_v27 }
 0x3e5   : > { %v1566_v13 = vmul.f32 %v1557_v24, %v1551_v53  ;;  %v1567_v18 = vmul.f32 %v1561_v25, %v1549_v42  ;;  %2006 = vmatprep.subr.bf16.mxu0 %v2552_v50  ;;  %v1846_v15 = vmul.f32 %v1839_v55, %v1830_v11  ;;  %v1847_v19 = vmul.f32 %v1843_v4, %v1832_v2 }
 0x3e6   : > { %2007 = vmatpush1.bf16.msra.mxu0 %v2551_v39 }
 0x3e7   : > { %v1505_v16 = vpop.permute.xlu1 %1504  ;;  %v2550_v63 = vpack.c.bf16 %v1567_v18, %v1565_v45  ;;  %v2549_v0 = vpack.c.bf16 %v1566_v13, %v1564_v43 }
 0x3e8   : > { %v1507_v1 = vsel %vm474_vm7, %v3208_v37, %v1505_v16  ;;  %v1509_v35 = vsel %vm474_vm7, %v1505_v16, %v3208_v37 }
 0x3e9   : > { %v1524_v9 = vmul.f32 %v1515_v40, %v1509_v35  ;;  %v1525_v10 = vmul.f32 %v1519_v41, %v1507_v1  ;;  %2008 = vmatprep.subr.bf16.mxu0 %v2550_v63 }
 0x3ea   : > { %2009 = vmatpush1.bf16.msra.mxu0 %v2549_v0 }
 0x3eb   : > { %v1829_v3 = vpop.permute.xlu1 %1828  ;;  %v2548_v6 = vpack.c.bf16 %v1525_v10, %v1523_v49  ;;  %v2547_v12 = vpack.c.bf16 %v1524_v9, %v1522_v56 }
 0x3ec   : > { %v1831_v37 = vsel %vm720_vm2, %v3251_v34, %v1829_v3  ;;  %v1833_v14 = vsel %vm720_vm2, %v1829_v3, %v3251_v34  ;;  %v2449_v34 = vcombine.low %v1866_v32, %v1866_v32 }
 0x3ed   : > { %v1848_v48 = vmul.f32 %v1839_v55, %v1831_v37  ;;  %v1849_v20 = vmul.f32 %v1843_v4, %v1833_v14  ;;  %2010 = vmatprep.subr.bf16.mxu0 %v2548_v6 }
 0x3ee   : > { %2011 = vmatpush1.bf16.msra.mxu0 %v2547_v12 }
 0x3ef   : > { %v2564_v21 = vpack.c.bf16 %v1849_v20, %v1847_v19  ;;  %v2563_v27 = vpack.c.bf16 %v1848_v48, %v1846_v15 }
 0x3f0   : > { %v2053_v36 = vpop.permute.xlu0 %2052 }
 0x3f1   : > { %2026 = vmatprep.subr.bf16.mxu0 %v2564_v21 }
 0x3f2   : > { %2027 = vmatpush2.bf16.msra.mxu0 %v2563_v27 }
 0x3f5   : > { %2029 = vmatmul.mubr.bf16.vlgmr.msra.gmra.mxu0 %v2609_v5  ;;  %v2073_v58 = vpop.permute.xlu0 %2072 }
 0x3f6   : > { %2470 = vmatprep.mubr.msk.bf16.mxu0 %vm1391_vm10, %v2450_v17 }
 0x3f8   : > { %v2058_v33 = vpop.permute.xlu1 %2057 }
 0x3fc   : > { %v2063_v22 = vpop.permute.xlu1 %2062 }
 0x3fd   : > { %2039 = vmatmul.mubr.bf16.gmra.mxu0 %v2449_v34 }
 0x401   : > { %v2077_v24 = vpop.permute.xlu1 %2076 }
 0x405   : > { %v2081_v50 = vpop.permute.xlu1 %2080 }
 0x4b5   : > { %v2030_v57 = vpop.f32.mrf.mxu0 }
 0x4b6   : > { %v2065_v52 = vmul.f32 %v2053_v36, %v2030_v57 }
 0x4b7   : > { %v2032_v7 = vpop.f32.mrf.mxu0 }
 0x4b8   : > { %v2066_v23 = vmul.f32 %v2053_v36, %v2032_v7  ;;  %v2083_v51 = vadd.f32 %v2073_v58, %v2065_v52 }
 0x4b9   : > { %v2034_v25 = vpop.f32.mrf.mxu0 }
 0x4ba   : > { %v2084_v26 = vadd.f32 %v2073_v58, %v2066_v23  ;;  %v2471_v28 = vmul.f32 -1.442695, %v2083_v51  ;;  %v2067_v46 = vmul.f32 %v2058_v33, %v2034_v25 }
 0x4bb   : > { %v2036_v29 = vpop.f32.mrf.mxu0 }
 0x4bc   : > { %2646 = vpow2.f32 %v2471_v28  ;;  %v2472_v30 = vmul.f32 -1.442695, %v2084_v26  ;;  %v2085_v44 = vadd.f32 %v2077_v24, %v2067_v46  ;;  %v2068_v54 = vmul.f32 %v2058_v33, %v2036_v29 }
 0x4bd   : > { %v2040_v59 = vpop.f32.mrf.mxu0 }
 0x4be   : > { %2648 = vpow2.f32 %v2472_v30  ;;  %v2473_v31 = vmul.f32 -1.442695, %v2085_v44  ;;  %v2086_v38 = vadd.f32 %v2077_v24, %v2068_v54  ;;  %v2069_v8 = vmul.f32 %v2063_v22, %v2040_v59 }
 0x4bf   : > { %v2042_v39 = vpop.f32.mrf.mxu0 }
 0x4c0   : > { %2650 = vpow2.f32 %v2473_v31  ;;  %v2474_v40 = vmul.f32 -1.442695, %v2086_v38  ;;  %v2087_v41 = vadd.f32 %v2081_v50, %v2069_v8  ;;  %v2070_v42 = vmul.f32 %v2063_v22, %v2042_v39 }
 0x4c1   : > { %v2044_v53 = vpop.f32.mrf.mxu0 }
 0x4c2   : > { %2652 = vpow2.f32 %v2474_v40  ;;  %v2475_v43 = vmul.f32 -1.442695, %v2087_v41  ;;  %v2088_v45 = vadd.f32 %v2081_v50, %v2070_v42 }
 0x4c3   : > { %v2045_v13 = vpop.f32.mrf.mxu0 }
 0x4c4   : > { %2654 = vpow2.f32 %v2475_v43  ;;  %v2476_v18 = vmul.f32 -1.442695, %v2088_v45 }
 0x4c6   : > { %2656 = vpow2.f32 %v2476_v18 }
 0x4c9   : > { %v2647_v60 = vpop.eup %2646 }
 0x4ca   : > { %v2107_v47 = vadd.f32 1.0, %v2647_v60 }
 0x4cb   : > { %v2649_v61 = vpop.eup %2648 }
 0x4cc   : > { %v2108_v62 = vadd.f32 1.0, %v2649_v61  ;;  %2658 = vrcp.f32 %v2107_v47 }
 0x4cd   : > { %v2651_v16 = vpop.eup %2650 }
 0x4ce   : > { %2660 = vrcp.f32 %v2108_v62  ;;  %v2109_v63 = vadd.f32 1.0, %v2651_v16 }
 0x4cf   : > { %v2653_v0 = vpop.eup %2652 }
 0x4d0   : > { %2662 = vrcp.f32 %v2109_v63  ;;  %v2110_v55 = vadd.f32 1.0, %v2653_v0 }
 0x4d1   : > { %v2655_v4 = vpop.eup %2654 }
 0x4d2   : > { %2664 = vrcp.f32 %v2110_v55  ;;  %v2111_v1 = vadd.f32 1.0, %v2655_v4 }
 0x4d3   : > { %v2657_v35 = vpop.eup %2656 }
 0x4d4   : > { %2666 = vrcp.f32 %v2111_v1  ;;  %v2112_v56 = vadd.f32 1.0, %v2657_v35 }
 0x4d6   : > { %2668 = vrcp.f32 %v2112_v56 }
 0x4d9   : > { %v2659_v49 = vpop.eup %2658 }
 0x4da   : > { %v2125_v9 = vmul.f32 %v2659_v49, %v2083_v51 }
 0x4db   : > { %v2661_v10 = vpop.eup %2660 }
 0x4dc   : > { %v2126_v11 = vmul.f32 %v2661_v10, %v2084_v26  ;;  %2131 = vst [vmem:[%s462_s24] sm:$0xff] %v2125_v9 }
 0x4dd   : > { %v2663_v2 = vpop.eup %2662 }
 0x4de   : > { %2132 = vst [vmem:[%s462_s24 + $0x8] sm:$0xff] %v2126_v11  ;;  %v2127_v3 = vmul.f32 %v2663_v2, %v2085_v44 }
 0x4df   : > { %v2665_v6 = vpop.eup %2664 }
 0x4e0   : > { %2133 = vst [vmem:[%s462_s24 + $0x10] sm:$0xff] %v2127_v3  ;;  %v2128_v12 = vmul.f32 %v2665_v6, %v2086_v38 }
 0x4e1   : > { %v2667_v37 = vpop.eup %2666 }
 0x4e2   : > { %2134 = vst [vmem:[%s462_s24 + $0x18] sm:$0xff] %v2128_v12  ;;  %v2129_v14 = vmul.f32 %v2667_v37, %v2087_v41 }
 0x4e3   : > { %v2669_v15 = vpop.eup %2668 }
 0x4e4   : > { %2135 = vst [vmem:[%s462_s24 + $0x20] sm:$0xff] %v2129_v14  ;;  %v2130_v19 = vmul.f32 %v2669_v15, %v2088_v45 }
 0x4e6   : > { %2136 = vst [vmem:[%s462_s24 + $0x28] sm:$0xff] %v2130_v19 }
 0x4e7 PF: > { %s23_s21 = sadd.s32 1, %s2676_s21  }
 0x4e8   : > { %p20_p4 = scmp.ge.s32.totalorder %s23_s21, 4  }
 0x4ea   :  { %22 = sbr.rel (!%p20_p4) target bundleno = 1 (0x1), region = 138 }

</bundles_post_ra>
